<compile_context>
chip_gen: v6e
topology: v6e:2x2x1
jax: 0.10.0
libtpu: 0.0.40
codegen_flags: <defaults>
</compile_context>

<pallas_src>
import functools

import jax
import jax.numpy as jnp
from jax import lax
from jax.experimental import pallas as pl
from jax.experimental.pallas import tpu as pltpu


def _self_attention_kernel(x_ref, wq_ref, bq_ref, wk_ref, bk_ref,
                           wv_ref, bv_ref, gamma_ref, o_ref,
                           k_scr, v_scr, *, tq, hw_real, hw_padded):
    # x_ref:   (C, HWp)  channel-major features of ONE batch element (resident)
    # wq/wk:   (C8, C), wv: (C, C)          -- 1x1 conv weights
    # bq:      (1, C8), bk: (C8, 1), bv: (C, 1)
    # gamma:   (1,) f32 in SMEM
    # o_ref:   (C, TQ)   channel-major output tile
    # k_scr:   (C8, HWp) f32 VMEM scratch (per batch)
    # v_scr:   (HWp, C)  bf16 VMEM scratch (per batch, token-major)
    qi = pl.program_id(1)

    # ---- once per batch element: project K and V into VMEM scratch ---------
    @pl.when(qi == 0)
    def _():
        x_full = x_ref[...]                                       # (C, HWp)
        k_scr[...] = jnp.dot(wk_ref[...], x_full,
                             preferred_element_type=jnp.float32) + bk_ref[...]
        v_cm = jnp.dot(wv_ref[...], x_full,
                       preferred_element_type=jnp.float32) + bv_ref[...]
        # Token-major + bf16 so the dominant P @ V matmul is MXU-native.
        v_scr[...] = jnp.transpose(v_cm, (1, 0)).astype(jnp.bfloat16)

    # ---- per query tile ------------------------------------------------------
    start = pl.multiple_of(qi * tq, tq)
    x_tile = x_ref[:, pl.ds(start, tq)]                           # (C, TQ)
    xq = jnp.transpose(x_tile, (1, 0))                            # (TQ, C)

    # Query projection: (TQ, C) @ (C8, C)^T -> (TQ, C8)
    q = lax.dot_general(
        xq, wq_ref[...], (((1,), (1,)), ((), ())),
        preferred_element_type=jnp.float32) + bq_ref[...]

    # energy[i, j] = <q_i, k_j>  -> (TQ, HWp); small K (=C8), keep f32.
    energy = jnp.dot(q, k_scr[...], preferred_element_type=jnp.float32)

    if hw_real != hw_padded:                                      # static branch
        col = lax.broadcasted_iota(jnp.int32, (tq, hw_padded), 1)
        energy = jnp.where(col < hw_real, energy, -jnp.inf)

    # Numerically-stable softmax over the key axis (lanes); normalization is
    # folded into the small (TQ, C) output instead of the full (TQ, HWp) map.
    m = jnp.max(energy, axis=-1, keepdims=True)                   # (TQ, 1)
    p = jnp.exp(energy - m)                                       # (TQ, HWp) f32
    denom = jnp.sum(p, axis=-1, keepdims=True)                    # (TQ, 1)

    # out[i, c] = sum_j p[i, j] * v[j, c]   -- bf16 MXU, f32 accumulation.
    out = jnp.dot(p.astype(jnp.bfloat16), v_scr[...],
                  preferred_element_type=jnp.float32)             # (TQ, C)
    out = out * pl.reciprocal(denom, approx=True)                 # EUP slot

    # Back to channel-major and fuse the gamma-scaled residual.
    o_ref[...] = gamma_ref[0] * jnp.transpose(out, (1, 0)) + x_tile


def _round_up(n, m):
    return ((n + m - 1) // m) * m


def _vmem_capacity_bytes():
    try:
        cap = getattr(pltpu.get_tpu_info(), "vmem_capacity_bytes", None)
        if cap:
            return int(cap)
    except Exception:
        pass
    return 64 * 1024 * 1024          # conservative (v7x-sized) fallback


def _choose_tiling(hw, c, c8, vmem_cap):
    """Pad HW to a multiple of 128 and pick the largest query tile in
    (512, 256, 128) that divides the padded HW and fits the VMEM budget."""
    hw_p = _round_up(max(hw, 128), 128)
    budget = int(0.6 * vmem_cap)
    for tq in (512, 256, 128):
        if hw_p % tq != 0:
            continue
        fixed = (2 * 4 * c * hw_p        # x block (double-buffered, f32)
                 + 4 * c8 * hw_p         # K scratch (f32)
                 + 2 * c * hw_p          # V scratch (bf16)
                 + 4 * c * hw_p)         # v_cm temporary at qi == 0
        per_tile = (2 * 4 * tq * hw_p    # energy + p (f32)
                    + 2 * tq * hw_p      # p (bf16)
                    + 4 * 4 * tq * c     # out tile + double-buffered o block
                    + 4 * (c * c + 2 * c8 * c))
        if fixed + per_tile <= budget:
            return tq, hw_p
    return 128, hw_p


def _const_spec(shape, index_map):
    """BlockSpec for a block whose index_map is constant over the whole grid:
    single-buffer it to save VMEM (falls back if pipeline_mode unsupported)."""
    try:
        return pl.BlockSpec(shape, index_map, pipeline_mode=pl.Buffered(1))
    except Exception:
        return pl.BlockSpec(shape, index_map)


def self_attention(x, wq, bq, wk, bk, wv, bv, gamma):
    """Self_Attention forward.

    x:     (B, C, H, W) f32
    wq/wk: (C//8, C), bq/bk: (C//8,)
    wv:    (C, C),    bv:    (C,)
    gamma: (1,) f32
    returns (B, C, H, W) f32
    """
    B, C, H, W = x.shape
    C8 = wq.shape[0]
    HW = H * W

    vmem_cap = _vmem_capacity_bytes()
    tq, HWp = _choose_tiling(HW, C, C8, vmem_cap)

    x_cm = x.reshape(B, C, HW)
    if HWp != HW:
        x_cm = jnp.pad(x_cm, ((0, 0), (0, 0), (0, HWp - HW)))

    grid = (B, HWp // tq)

    # Live-VMEM estimate for the compiler limit.
    est = (2 * 4 * C * HWp + 4 * C8 * HWp + 2 * HWp * C + 4 * C * HWp
           + 3 * 4 * tq * HWp + 6 * 4 * tq * C
           + 4 * (C * C + 2 * C8 * C + 2 * C8 + C))
    vmem_limit = int(min(0.85 * vmem_cap, max(32 * 2 ** 20, 1.35 * est)))

    cost = pl.CostEstimate(
        flops=int(B * (2 * HWp * C * (2 * C8 + C)          # Q/K/V projections
                       + 2 * HWp * HWp * (C8 + C))),        # energy + P@V
        transcendentals=int(B * HWp * HWp),                  # exp
        bytes_accessed=int(4 * (2 * B * C * HWp + C * C + 2 * C8 * C
                                + 2 * C8 + C + 1)),
    )

    kernel = functools.partial(_self_attention_kernel, tq=tq,
                               hw_real=HW, hw_padded=HWp)

    out_cm = pl.pallas_call(
        kernel,
        out_shape=jax.ShapeDtypeStruct((B, C, HWp), jnp.float32),
        grid_spec=pltpu.PrefetchScalarGridSpec(
            num_scalar_prefetch=0,
            grid=grid,
            in_specs=[
                # x: full channel-major (C, HWp) block per batch element,
                # resident across all of its query tiles.
                pl.BlockSpec((None, C, HWp), lambda b, qi: (b, 0, 0)),
                _const_spec((C8, C), lambda b, qi: (0, 0)),   # Wq
                _const_spec((1, C8), lambda b, qi: (0, 0)),   # bq (row)
                _const_spec((C8, C), lambda b, qi: (0, 0)),   # Wk
                _const_spec((C8, 1), lambda b, qi: (0, 0)),   # bk (column)
                _const_spec((C, C), lambda b, qi: (0, 0)),    # Wv
                _const_spec((C, 1), lambda b, qi: (0, 0)),    # bv (column)
                pl.BlockSpec(memory_space=pltpu.MemorySpace.SMEM),  # gamma
            ],
            out_specs=pl.BlockSpec((None, C, tq), lambda b, qi: (b, 0, qi)),
            scratch_shapes=[
                pltpu.VMEM((C8, HWp), jnp.float32),    # K (channel-major, f32)
                pltpu.VMEM((HWp, C), jnp.bfloat16),    # V (token-major, bf16)
            ],
        ),
        compiler_params=pltpu.CompilerParams(
            dimension_semantics=("parallel", "arbitrary"),
            vmem_limit_bytes=vmem_limit,
        ),
        cost_estimate=cost,
    )(
        x_cm,
        wq, bq.reshape(1, C8),
        wk, bk.reshape(C8, 1),
        wv, bv.reshape(C, 1),
        gamma.reshape(1).astype(jnp.float32),
    )

    if HWp != HW:
        out_cm = out_cm[:, :, :HW]
    return out_cm.reshape(B, C, H, W)


def _self_attention_ref(x, wq, bq, wk, bk, wv, bv, gamma):
    """Pure-JAX f32 reference mirroring the PyTorch module."""
    B, C, H, W = x.shape
    hw = H * W
    hp = lax.Precision.HIGHEST
    xf = x.reshape(B, C, hw)
    q = jnp.einsum("oc,bcn->bon", wq, xf, precision=hp) + bq[None, :, None]
    k = jnp.einsum("oc,bcn->bon", wk, xf, precision=hp) + bk[None, :, None]
    v = jnp.einsum("oc,bcn->bon", wv, xf, precision=hp) + bv[None, :, None]
    energy = jnp.einsum("bdi,bdj->bij", q, k, precision=hp)     # (B, HW, HW)
    attn = jax.nn.softmax(energy, axis=-1)
    out = jnp.einsum("bcj,bij->bci", v, attn, precision=hp)     # (B, C, HW)
    return (gamma * out).reshape(B, C, H, W) + x


if __name__ == "__main__":
    key = jax.random.PRNGKey(0)
    ks = jax.random.split(key, 8)

    B, C, H, W = 2, 32, 16, 16          # HW = 256, C//8 = 4
    C8 = C // 8

    x = jax.random.normal(ks[0], (B, C, H, W), dtype=jnp.float32)
    wq = 0.1 * jax.random.normal(ks[1], (C8, C), dtype=jnp.float32)
    bq = 0.1 * jax.random.normal(ks[2], (C8,), dtype=jnp.float32)
    wk = 0.1 * jax.random.normal(ks[3], (C8, C), dtype=jnp.float32)
    bk = 0.1 * jax.random.normal(ks[4], (C8,), dtype=jnp.float32)
    wv = 0.1 * jax.random.normal(ks[5], (C, C), dtype=jnp.float32)
    bv = 0.1 * jax.random.normal(ks[6], (C,), dtype=jnp.float32)
    gamma = 0.02 * jax.random.normal(ks[7], (1,), dtype=jnp.float32)

    # Tolerances account for the bf16 P@V path (standard flash-attn practice).
    tol = dict(atol=2e-2, rtol=2e-2)

    # Module-like gamma (N(0, 0.02)).
    out = jax.block_until_ready(self_attention(x, wq, bq, wk, bk, wv, bv, gamma))
    ref = _self_attention_ref(x, wq, bq, wk, bk, wv, bv, gamma)
    assert out.shape == (B, C, H, W)
    assert jnp.allclose(out, ref, **tol), "mismatch vs reference (gamma~N(0,0.02))"

    # gamma = 1 exercises the attention branch at full strength.
    g1 = jnp.ones((1,), dtype=jnp.float32)
    out1 = jax.block_until_ready(self_attention(x, wq, bq, wk, bk, wv, bv, g1))
    ref1 = _self_attention_ref(x, wq, bq, wk, bk, wv, bv, g1)
    assert jnp.allclose(out1, ref1, **tol), "mismatch vs reference (gamma=1)"

    # Non-128-multiple spatial size exercises the padded / masked-key path.
    xp = jax.random.normal(ks[0], (1, C, 10, 10), dtype=jnp.float32)
    outp = jax.block_until_ready(self_attention(xp, wq, bq, wk, bk, wv, bv, g1))
    refp = _self_attention_ref(xp, wq, bq, wk, bk, wv, bv, g1)
    assert outp.shape == (1, C, 10, 10)
    assert jnp.allclose(outp, refp, **tol), "mismatch vs reference (padded HW)"

    print("KERNEL_OK")
</pallas_src>

<mosaic_0001>
module attributes {stable_mosaic.version = 11 : i64} {
  func.func @_self_attention_kernel(%arg0: i32, %arg1: i32, %arg2: memref<1x32x256xf32, #tpu.memory_space<vmem>>, %arg3: memref<4x32xf32, #tpu.memory_space<vmem>>, %arg4: memref<1x4xf32, #tpu.memory_space<vmem>>, %arg5: memref<4x32xf32, #tpu.memory_space<vmem>>, %arg6: memref<4x1xf32, #tpu.memory_space<vmem>>, %arg7: memref<32x32xf32, #tpu.memory_space<vmem>>, %arg8: memref<32x1xf32, #tpu.memory_space<vmem>>, %arg9: memref<1xf32, #tpu.memory_space<smem>>, %arg10: memref<1x32x256xf32, #tpu.memory_space<vmem>>, %arg11: memref<4x256xf32, #tpu.memory_space<vmem>>, %arg12: memref<256x32xbf16, #tpu.memory_space<vmem>>) attributes {dimension_semantics = [#tpu.dimension_semantics<parallel>, #tpu.dimension_semantics<arbitrary>], iteration_bounds = array<i64: 2, 1>, scalar_prefetch = 0 : i64, scratch_operands = 2 : i64, tpu.core_type = #tpu.core_type<tc>, window_params = [{transform_indices = @transform_0, window_bounds = array<i64: 1, 32, 256>}, {pipeline_mode = #tpu.pipeline_mode<synchronous>, transform_indices = @transform_1, window_bounds = array<i64: 4, 32>}, {pipeline_mode = #tpu.pipeline_mode<synchronous>, transform_indices = @transform_2, window_bounds = array<i64: 1, 4>}, {pipeline_mode = #tpu.pipeline_mode<synchronous>, transform_indices = @transform_3, window_bounds = array<i64: 4, 32>}, {pipeline_mode = #tpu.pipeline_mode<synchronous>, transform_indices = @transform_4, window_bounds = array<i64: 4, 1>}, {pipeline_mode = #tpu.pipeline_mode<synchronous>, transform_indices = @transform_5, window_bounds = array<i64: 32, 32>}, {pipeline_mode = #tpu.pipeline_mode<synchronous>, transform_indices = @transform_6, window_bounds = array<i64: 32, 1>}, {transform_indices = @transform_7, window_bounds = array<i64: 1>}, {transform_indices = @transform_8, window_bounds = array<i64: 1, 32, 256>}]} {
    %c0_i32 = arith.constant 0 : i32
    %0 = arith.cmpi eq, %arg1, %c0_i32 : i32
    %1 = arith.extui %0 : i1 to i32
    %c0_i32_0 = arith.constant 0 : i32
    %2 = arith.cmpi ne, %1, %c0_i32_0 : i32
    scf.if %2 {
      %c0_18 = arith.constant 0 : index
      %c0_19 = arith.constant 0 : index
      %c0_20 = arith.constant 0 : index
      %37 = vector.load %arg2[%c0_18, %c0_19, %c0_20] : memref<1x32x256xf32, #tpu.memory_space<vmem>>, vector<1x32x256xf32>
      %38 = vector.shape_cast %37 : vector<1x32x256xf32> to vector<32x256xf32>
      %c0_21 = arith.constant 0 : index
      %c0_22 = arith.constant 0 : index
      %39 = vector.load %arg5[%c0_21, %c0_22] : memref<4x32xf32, #tpu.memory_space<vmem>>, vector<4x32xf32>
      %cst_23 = arith.constant dense<0.000000e+00> : vector<4x256xf32>
      %40 = tpu.matmul %39, %38, %cst_23 {dimension_numbers = #tpu.dot_dimension_numbers<[1], [0], [0], [1], [0, 0, 1, 1], [], []>} : vector<4x32xf32>, vector<32x256xf32>, vector<4x256xf32> -> vector<4x256xf32>
      %c0_24 = arith.constant 0 : index
      %c0_25 = arith.constant 0 : index
      %41 = vector.load %arg6[%c0_24, %c0_25] : memref<4x1xf32, #tpu.memory_space<vmem>>, vector<4x1xf32>
      %42 = vector.broadcast %41 : vector<4x1xf32> to vector<4x256xf32>
      %43 = arith.addf %40, %42 : vector<4x256xf32>
      %c0_26 = arith.constant 0 : index
      %c0_27 = arith.constant 0 : index
      %44 = vector.load %arg11[%c0_26, %c0_27] : memref<4x256xf32, #tpu.memory_space<vmem>>, vector<4x256xf32>
      tpu.vector_store %arg11[%c0_26, %c0_27], %43 {strides = array<i32>} : memref<4x256xf32, #tpu.memory_space<vmem>>, vector<4x256xf32>,
      %c0_28 = arith.constant 0 : index
      %c0_29 = arith.constant 0 : index
      %45 = vector.load %arg7[%c0_28, %c0_29] : memref<32x32xf32, #tpu.memory_space<vmem>>, vector<32x32xf32>
      %cst_30 = arith.constant dense<0.000000e+00> : vector<32x256xf32>
      %46 = tpu.matmul %45, %38, %cst_30 {dimension_numbers = #tpu.dot_dimension_numbers<[1], [0], [0], [1], [0, 0, 1, 1], [], []>} : vector<32x32xf32>, vector<32x256xf32>, vector<32x256xf32> -> vector<32x256xf32>
      %c0_31 = arith.constant 0 : index
      %c0_32 = arith.constant 0 : index
      %47 = vector.load %arg8[%c0_31, %c0_32] : memref<32x1xf32, #tpu.memory_space<vmem>>, vector<32x1xf32>
      %48 = vector.broadcast %47 : vector<32x1xf32> to vector<32x256xf32>
      %49 = arith.addf %46, %48 : vector<32x256xf32>
      %50 = tpu.transpose %49, [1, 0] : vector<32x256xf32> -> vector<256x32xf32>
      %51 = arith.truncf %50 : vector<256x32xf32> to vector<256x32xbf16>
      %c0_33 = arith.constant 0 : index
      %c0_34 = arith.constant 0 : index
      %52 = vector.load %arg12[%c0_33, %c0_34] : memref<256x32xbf16, #tpu.memory_space<vmem>>, vector<256x32xbf16>
      tpu.vector_store %arg12[%c0_33, %c0_34], %51 {strides = array<i32>} : memref<256x32xbf16, #tpu.memory_space<vmem>>, vector<256x32xbf16>,
    } else {
    }
    %c256_i32 = arith.constant 256 : i32
    %3 = arith.muli %arg1, %c256_i32 : i32
    %4 = tpu.assume_multiple %3, 256 : i32
    %c0 = arith.constant 0 : index
    %c0_1 = arith.constant 0 : index
    %5 = arith.index_cast %4 : i32 to index
    %6 = vector.load %arg2[%c0, %c0_1, %5] : memref<1x32x256xf32, #tpu.memory_space<vmem>>, vector<1x32x256xf32>
    %7 = vector.shape_cast %6 : vector<1x32x256xf32> to vector<32x256xf32>
    %8 = tpu.transpose %7, [1, 0] : vector<32x256xf32> -> vector<256x32xf32>
    %c0_2 = arith.constant 0 : index
    %c0_3 = arith.constant 0 : index
    %9 = vector.load %arg3[%c0_2, %c0_3] : memref<4x32xf32, #tpu.memory_space<vmem>>, vector<4x32xf32>
    %cst = arith.constant dense<0.000000e+00> : vector<256x4xf32>
    %10 = tpu.matmul %8, %9, %cst {dimension_numbers = #tpu.dot_dimension_numbers<[1], [1], [0], [0], [0, 0, 1, 0], [], []>} : vector<256x32xf32>, vector<4x32xf32>, vector<256x4xf32> -> vector<256x4xf32>
    %c0_4 = arith.constant 0 : index
    %c0_5 = arith.constant 0 : index
    %11 = vector.load %arg4[%c0_4, %c0_5] : memref<1x4xf32, #tpu.memory_space<vmem>>, vector<1x4xf32>
    %12 = vector.broadcast %11 : vector<1x4xf32> to vector<256x4xf32>
    %13 = arith.addf %10, %12 : vector<256x4xf32>
    %c0_6 = arith.constant 0 : index
    %c0_7 = arith.constant 0 : index
    %14 = vector.load %arg11[%c0_6, %c0_7] : memref<4x256xf32, #tpu.memory_space<vmem>>, vector<4x256xf32>
    %cst_8 = arith.constant dense<0.000000e+00> : vector<256x256xf32>
    %15 = tpu.matmul %13, %14, %cst_8 {dimension_numbers = #tpu.dot_dimension_numbers<[1], [0], [0], [1], [0, 0, 1, 1], [], []>} : vector<256x4xf32>, vector<4x256xf32>, vector<256x256xf32> -> vector<256x256xf32>
    %cst_9 = arith.constant dense<0xFF800000> : vector<256xf32>
    %16 = vector.multi_reduction <maximumf>, %15, %cst_9 [1] : vector<256x256xf32> to vector<256xf32>
    %17 = vector.shape_cast %16 : vector<256xf32> to vector<256x1xf32>
    %18 = vector.broadcast %17 : vector<256x1xf32> to vector<256x256xf32>
    %19 = arith.subf %15, %18 : vector<256x256xf32>
    %20 = math.exp %19 : vector<256x256xf32>
    %cst_10 = arith.constant dense<0.000000e+00> : vector<256xf32>
    %21 = vector.multi_reduction <add>, %20, %cst_10 [1] : vector<256x256xf32> to vector<256xf32>
    %22 = vector.shape_cast %21 : vector<256xf32> to vector<256x1xf32>
    %23 = arith.truncf %20 : vector<256x256xf32> to vector<256x256xbf16>
    %c0_11 = arith.constant 0 : index
    %c0_12 = arith.constant 0 : index
    %24 = vector.load %arg12[%c0_11, %c0_12] : memref<256x32xbf16, #tpu.memory_space<vmem>>, vector<256x32xbf16>
    %cst_13 = arith.constant dense<0.000000e+00> : vector<256x32xf32>
    %25 = tpu.matmul %23, %24, %cst_13 {dimension_numbers = #tpu.dot_dimension_numbers<[1], [0], [0], [1], [0, 0, 1, 1], [], []>} : vector<256x256xbf16>, vector<256x32xbf16>, vector<256x32xf32> -> vector<256x32xf32>
    %26 = tpu.reciprocal %22 {approx = true} : vector<256x1xf32> -> vector<256x1xf32>
    %27 = vector.broadcast %26 : vector<256x1xf32> to vector<256x32xf32>
    %28 = arith.mulf %25, %27 : vector<256x32xf32>
    %c0_14 = arith.constant 0 : index
    %29 = memref.load %arg9[%c0_14] : memref<1xf32, #tpu.memory_space<smem>>
    %30 = tpu.transpose %28, [1, 0] : vector<256x32xf32> -> vector<32x256xf32>
    %31 = vector.broadcast %29 : f32 to vector<32x256xf32>
    %32 = arith.mulf %31, %30 : vector<32x256xf32>
    %33 = arith.addf %32, %7 : vector<32x256xf32>
    %c0_15 = arith.constant 0 : index
    %c0_16 = arith.constant 0 : index
    %c0_17 = arith.constant 0 : index
    %34 = vector.load %arg10[%c0_15, %c0_16, %c0_17] : memref<1x32x256xf32, #tpu.memory_space<vmem>>, vector<1x32x256xf32>
    %35 = vector.shape_cast %34 : vector<1x32x256xf32> to vector<32x256xf32>
    %36 = vector.shape_cast %33 : vector<32x256xf32> to vector<1x32x256xf32>
    tpu.vector_store %arg10[%c0_15, %c0_16, %c0_17], %36 {strides = array<i32>} : memref<1x32x256xf32, #tpu.memory_space<vmem>>, vector<1x32x256xf32>,
    return
  }
  func.func @transform_0(%arg0: i32, %arg1: i32) -> (i32, i32, i32) {
    %c0_i32 = arith.constant 0 : i32
    %c0_i32_0 = arith.constant 0 : i32
    %c0_i32_1 = arith.constant 0 : i32
    return %arg0, %c0_i32, %c0_i32_0 : i32, i32, i32
  }
  func.func @transform_1(%arg0: i32, %arg1: i32) -> (i32, i32) {
    %c0_i32 = arith.constant 0 : i32
    %c0_i32_0 = arith.constant 0 : i32
    %c0_i32_1 = arith.constant 0 : i32
    return %c0_i32, %c0_i32_0 : i32, i32
  }
  func.func @transform_2(%arg0: i32, %arg1: i32) -> (i32, i32) {
    %c0_i32 = arith.constant 0 : i32
    %c0_i32_0 = arith.constant 0 : i32
    %c0_i32_1 = arith.constant 0 : i32
    return %c0_i32, %c0_i32_0 : i32, i32
  }
  func.func @transform_3(%arg0: i32, %arg1: i32) -> (i32, i32) {
    %c0_i32 = arith.constant 0 : i32
    %c0_i32_0 = arith.constant 0 : i32
    %c0_i32_1 = arith.constant 0 : i32
    return %c0_i32, %c0_i32_0 : i32, i32
  }
  func.func @transform_4(%arg0: i32, %arg1: i32) -> (i32, i32) {
    %c0_i32 = arith.constant 0 : i32
    %c0_i32_0 = arith.constant 0 : i32
    %c0_i32_1 = arith.constant 0 : i32
    return %c0_i32, %c0_i32_0 : i32, i32
  }
  func.func @transform_5(%arg0: i32, %arg1: i32) -> (i32, i32) {
    %c0_i32 = arith.constant 0 : i32
    %c0_i32_0 = arith.constant 0 : i32
    %c0_i32_1 = arith.constant 0 : i32
    return %c0_i32, %c0_i32_0 : i32, i32
  }
  func.func @transform_6(%arg0: i32, %arg1: i32) -> (i32, i32) {
    %c0_i32 = arith.constant 0 : i32
    %c0_i32_0 = arith.constant 0 : i32
    %c0_i32_1 = arith.constant 0 : i32
    return %c0_i32, %c0_i32_0 : i32, i32
  }
  func.func @transform_7(%arg0: i32, %arg1: i32) -> i32 {
    %c0_i32 = arith.constant 0 : i32
    %c0_i32_0 = arith.constant 0 : i32
    return %c0_i32 : i32
  }
  func.func @transform_8(%arg0: i32, %arg1: i32) -> (i32, i32, i32) {
    %c0_i32 = arith.constant 0 : i32
    %c0_i32_0 = arith.constant 0 : i32
    return %arg0, %c0_i32, %arg1 : i32, i32, i32
  }
}

</mosaic_0001>

<bundles_post_ra>
// kernel: tpu_custom_call.1
= control target key start
LH: loop header
LB: loop body
LE: loop exit
PB: predicated region body
PF: predicated region fallthrough
CT: control target
= control target key end

     0   :  { %s4085_s0 = inlined_call_operand.hbm [shape: f32[2,32,256], index: 0, kind: input, shape index: {}]   ;;  %s4086_s1 = inlined_call_operand.vmem [shape: f32[4,32], index: 1, kind: input, shape index: {}]   ;;  %s4087_s2 = inlined_call_operand.vmem [shape: f32[1,4], index: 2, kind: input, shape index: {}]   ;;  %s4088_s3 = inlined_call_operand.vmem [shape: f32[4,32], index: 3, kind: input, shape index: {}]   ;;  %s4089_s4 = inlined_call_operand.vmem [shape: f32[4,1], index: 4, kind: input, shape index: {}]   ;;  %s4090_s5 = inlined_call_operand.vmem [shape: f32[32,32], index: 5, kind: input, shape index: {}]   ;;  %s4091_s6 = inlined_call_operand.vmem [shape: f32[32,1], index: 6, kind: input, shape index: {}]   ;;  %s4092_s7 = inlined_call_operand.<no memory space> [shape: f32[1], index: 7, kind: input, shape index: {}]   ;;  %s4093_s8 = inlined_call_operand.hbm [shape: f32[2,32,256], index: 8, kind: output, shape index: {}]  }
   0x1   :  { %13 = sst [smem:[#allocation4]] %s4092_s7 }
   0x2   :  { %14 = vsyncpa [#allocation6], 0 }
   0x3   :  { %16 = vsyncpa [#allocation6 + $0x1], 0 }
   0x4   :  { %17 = vsyncpa [#allocation7], 0 }
   0x5   :  { %19 = vsyncpa [#allocation7 + $0x1], 0  ;;  %s3435_s29 = smov 0   ;;  %s3437_s30 = smov 0  }
   0x6   :  { %s3439_s9 = smov 0   ;;  %s3441_s10 = smov 0  }
   0x7   :  { %s3443_s11 = smov 0   ;;  %s3445_s12 = smov 0  }
   0x8 LB: > { %s2527_s7 = sadd.s32 4294967295, %s3377_s12   ;;  %s2528_s13 = sadd.s32 4294967294, %s3377_s12   ;;  %s3377_s12 = sphi %s3445_s12, %s25_s12   ;;  %s3373_s11 = sphi %s3443_s11, %s4146_s11   ;;  %s3369_s10 = sphi %s3441_s10, %s4145_s10   ;;  %s3365_s9 = sphi %s3439_s9, %s4144_s9   ;;  %s3361_s30 = sphi %s3437_s30, %s4143_s30   ;;  %s3357_s29 = sphi %s3435_s29, %s4142_s29  }
   0x9   : > { %s37_s14 = sadd.s32 1, %s3373_s11  ;;  %s44_s15 = sadd.s32 1, %s3365_s9 }
   0xa   : > { %p39_p0 = scmp.ge.s32.totalorder %s37_s14, 2  ;;  %p51_p1 = scmp.ne.s32.totalorder %s3365_s9, %s3361_s30 }
   0xb   : > { %p52_p2 = scmp.eq.s32.totalorder %s3377_s12, 0  ;;  %p57_p3 = scmp.ne.s32.totalorder %s3361_s30, %s3357_s29 }
   0xc   : > { %s4148_s14 = smov (%p39_p0, %s37_s14), 0  ;;  %p58_p5 = scmp.eq.s32.totalorder %s2527_s7, 0 }
   0xd   : > { %4108 = sst [smem:[#allocation11_spill]] %s4148_s14  ;;  %p3476_p4 = por %p52_p2, %p51_p1 }
   0xe   : > { %s41_s17 = ssub.s32 %s3373_s11, %s4148_s14  ;;  %p230_p6 = scmp.eq.s32.totalorder %s2527_s7, 1 }
   0xf   : > { %p42_p7 = scmp.eq.s32.totalorder %s41_s17, 0  ;;  %p3482_p8 = por %p58_p5, %p57_p3 }
  0x10   : > { %p3486_p9 = por %p230_p6, %p51_p1  ;;  %p236_p10 = scmp.eq.s32.totalorder %s2528_s13, 1 }
  0x11   : > { %s3491_s20 = scalar_select %p42_p7, %s3365_s9, %s44_s15  }
  0x12   : > { %p3493_p11 = por %p236_p10, %p57_p3  ;;  %p2907_p13 = scmp.lt.s32.totalorder %s3377_s12, 2 }
  0x13   : > { %s277_s22 = sand.u32 1, %s3365_s9   ;;  %s2663_s24 = sshll.u32 %s3373_s11, 10 }
  0x14   : > { %s2531_s23 = sshll.u32 %s277_s22, 6  ;;  %s287_s27 = scalar_lea.hbm %s4085_s0, %s2663_s24 }
  0x15   : > { %s281_s28 = scalar_lea.vmem [#allocation5], %s2531_s23  ;;  %p3506_p0 = pnand %p2907_p13, %p3476_p4 }
  0x16   : > { %s288_s7 = sshll.u32 %s281_s28, 4  ;;  %p2534_p1 = scmp.ge.s32.totalorder %s3377_s12, 1  ;;  %s289_s7 = int_to_ptr.vmem [resolvable:$true] %s288_s7 }
  0x17   : > { %s278_s15 = scalar_lea.sflag [#allocation6], %s277_s22  ;;  %p3271_p2 = pneg %p3506_p0 }
  0x18   : > { %s3282_s17 = scalar_lea.vmem %s289_s7, 1024  ;;  %s3379_s14 = smov [#allocation5]  }
  0x19   : > { %p3283_p3 = scmp.ne.s32.totalorder %s289_s7, %s3282_s17  ;;  %s3287_s25 = sshll.u32 %s3379_s14, 4  ;;  %s3288_s25 = int_to_ptr.vmem [resolvable:$false] %s3287_s25 }
  0x1a   : > { %s3289_s23 = scalar_lea.vmem %s3288_s25, 2048  ;;  %p3290_p7 = scmp.lt.s32.totalorder %s289_s7, %s3288_s25 }
  0x1b   : > { %p3285_p5 = pnand %p3283_p3, %p3271_p2  ;;  %p3291_p10 = scmp.lt.s32.totalorder %s3289_s23, %s3282_s17 }
  0x1d   : > { %p3286_p6 = pneg %p3285_p5  ;;  %p3292_p12 = por %p3291_p10, %p3290_p7 }
  0x1f   : > { %p3293_p4 = pnand %p3292_p12, %p3286_p6 }
  0x21   : > { %3296 = shalt.err (!%p3293_p4)
}
  0x22   : > { %s3380_s16 = smov 256   ;;  %s3381_s22 = smov 16  }
  0x23   : > { %2902 = dma.hbm_to_vmem [thread:$0]  (!%p3506_p0), %s287_s27, 1024, %s289_s7, %s278_s15, %s3380_s16, %s3380_s16, %s3381_s22  }
  0x24   : > { %p296_p13 = scmp.lt.s32.totalorder %s3377_s12, 3 }
  0x26   : > { %p297_p2 = pnand %p2534_p1, %p296_p13 }
  0x28   : > { %300 = sbr.rel (%p297_p2) target bundleno = 1156 (0x484), region = 52 }
  0x2d   : > { %s3519_s14 = sand.u32 1, %s3361_s30  }
  0x2e   : > { %s2535_s24 = sshll.u32 %s3519_s14, 6  ;;  %s303_s26 = scalar_lea.sflag [#allocation6], %s3519_s14 }
  0x2f   : > { %s3525_s28 = scalar_lea.vmem [#allocation5], %s2535_s24 }
  0x30   : > { %3348 = dma.done.wait (%p3482_p8), %s303_s26, 1024  }
  0x31   : > { %3350 = vsyncadd (%p3482_p8), %s303_s26, 4294966272  ;;  %v3382_v0 = vmov 0.0   ;;  %v799_v1 = vld [vmem:[%s3525_s28] sm:$0xff]  ;;  %v800_v2 = vld [vmem:[%s3525_s28 + $0x8] sm:$0xff]  ;;  %vm360_vm0 = vcmask 261120   ;;  %v3383_v15 = vmov 0  }
  0x32   : > { %428 = vmatprep.mubr.f32.mxu0 %v3382_v0  ;;  %544 = vmatprep.mubr.f32.mxu1 %v3382_v0  ;;  %v801_v3 = vld [vmem:[%s3525_s28 + $0x10] sm:$0xff]  ;;  %v806_v4 = vld [vmem:[%s3525_s28 + $0x38] sm:$0xff]  ;;  %v804_v7 = vld [vmem:[%s3525_s28 + $0x28] sm:$0xff]  ;;  %vm1304_vm1 = vcmask 1043456   ;;  %vm1207_vm2 = vcmask 31744   ;;  %vm761_vm3 = vcmask 257024  }
  0x33   : > { %807 = vxpose.xlu0.b32.start [1/4] (short) %v799_v1, 128  ;;  %839 = vxpose.xlu1.b32.start [1/4] (short) %v800_v2, 128  ;;  %v805_v5 = vld [vmem:[%s3525_s28 + $0x30] sm:$0xff]  ;;  %v802_v6 = vld [vmem:[%s3525_s28 + $0x18] sm:$0xff]  ;;  %v803_v8 = vld [vmem:[%s3525_s28 + $0x20] sm:$0xff]  ;;  %s2335_s7 = sld [smem:[#allocation4]]  ;;  %s4013_s13 = scalar_lea.vmem [#allocation8], %s2535_s24 }
  0x34   : > { %388 = vmatprep.subr.mxu0 %v806_v4  ;;  %504 = vmatprep.subr.mxu1 %v806_v4  ;;  %v353_v9 = vld [vmem:[%s4088_s3] sm:$0xf]  ;;  %v441_v12 = vld [vmem:[%s4090_s5 + $0x8] sm:$0xff]  ;;  %v442_v13 = vld [vmem:[%s4090_s5 + $0x10] sm:$0xff]  ;;  %s2441_s24 = sshll.u32 %s4013_s13, 4  ;;  %s2696_s15 = sshll.u32 %s3369_s10, 10  ;;  %s4029_s24 = int_to_ptr.vmem [resolvable:$true] %s2441_s24 }
  0x35   : > { %389 = vmatpush1.msra.mxu0 %v805_v5  ;;  %505 = vmatpush1.msra.mxu1 %v805_v5  ;;  %v871_v10 = vld [vmem:[%s4086_s1] sm:$0xf]  ;;  %v443_v14 = vld [vmem:[%s4090_s5 + $0x18] sm:$0xff]  ;;  %v445_v17 = vld [vmem:[%s4091_s6 + $0x8] sm:$0xff]  ;;  %s4035_s23 = scalar_lea.hbm %s4093_s8, %s2696_s15  ;;  %s2426_s16 = scalar_lea.sflag [#allocation7], %s3519_s14 }
  0x36   : > { %390 = vmatprep.subr.mxu0 %v804_v7  ;;  %506 = vmatprep.subr.mxu1 %v804_v7  ;;  %v440_v11 = vld [vmem:[%s4090_s5] sm:$0xff]  ;;  %v446_v18 = vld [vmem:[%s4091_s6 + $0x10] sm:$0xff]  ;;  %v447_v20 = vld [vmem:[%s4091_s6 + $0x18] sm:$0xff]  ;;  %s3297_s22 = scalar_lea.vmem %s4029_s24, 1024  ;;  %s3384_s10 = smov [#allocation8]  }
  0x37   : > { %808 = vxpose.xlu0.b32.cont [2/4] (short) %v801_v3, 128  ;;  %840 = vxpose.xlu1.b32.cont [2/4] (short) %v802_v6, 128  ;;  %v444_v16 = vld [vmem:[%s4091_s6] sm:$0xff]  ;;  %p3298_p8 = scmp.ne.s32.totalorder %s4029_s24, %s3297_s22  ;;  %s3301_s26 = sshll.u32 %s3384_s10, 4  ;;  %s3302_s26 = int_to_ptr.vmem [resolvable:$false] %s3301_s26 }
  0x38   : > { %391 = vmatpush1.msra.mxu0 %v803_v8  ;;  %507 = vmatpush1.msra.mxu1 %v803_v8  ;;  %v354_v19 = vld [vmem:[%s4089_s4] sm:$0xf]  ;;  %s3303_s18 = scalar_lea.vmem %s3302_s26, 2048  ;;  %p3304_p1 = scmp.lt.s32.totalorder %s4029_s24, %s3302_s26 }
  0x39   : > { %392 = vmatprep.subr.mxu0 %v802_v6  ;;  %508 = vmatprep.subr.mxu1 %v802_v6  ;;  %p3299_p12 = pnand %p3298_p8, %p3486_p9  ;;  %p3305_p3 = scmp.lt.s32.totalorder %s3303_s18, %s3297_s22 }
  0x3a   : > { %393 = vmatpush1.msra.mxu0 %v801_v3  ;;  %509 = vmatpush1.msra.mxu1 %v801_v3 }
  0x3b   : > { %809 = vxpose.xlu0.b32.cont [3/4] (short) %v803_v8, 128  ;;  %394 = vmatprep.subr.mxu0 %v800_v2  ;;  %p3300_p0 = pneg %p3299_p12  ;;  %p3306_p5 = por %p3305_p3, %p3304_p1 }
  0x3c   : > { %841 = vxpose.xlu1.b32.cont [3/4] (short) %v804_v7, 128  ;;  %395 = vmatpush1.msra.mxu0 %v799_v1 }
  0x3d   : > { %2537 = vmatmul.mubr.msk.f32.vlgmr.msra.gmra.mxu0 %vm360_vm0, %v353_v9  ;;  %2843 = vmatprep.subr.msk.mxu0 %vm360_vm0, %v871_v10  ;;  %p3307_p6 = pnand %p3306_p5, %p3300_p0 }
  0x3e   : > { %2844 = vmatpush3.xpose.msk.msra.mxu0 %vm360_vm0, %v871_v10  ;;  %510 = vmatprep.subr.mxu1 %v800_v2 }
  0x3f   : > { %810 = vxpose.xlu0.b32.end [4/4] (short) %v805_v5, 128  ;;  %511 = vmatpush1.msra.mxu1 %v799_v1 }
  0x40   : > { %842 = vxpose.xlu1.b32.end [4/4] (short) %v806_v4, 128  ;;  %2893 = vmatprep.subr.msk.mxu1 %vm360_vm0, %v871_v10 }
  0x41   : > { %2538 = vmatmul.mubr.msk.f32.vlgmr.msra.gmra.mxu1 %vm360_vm0, %v440_v11 }
  0x42   : > { %550 = vmatprep.mubr.f32.mxu1 %v3382_v0  ;;  %2894 = vmatpush3.xpose.msk.msra.mxu1 %vm360_vm0, %v871_v10 }
  0x45   : > { %2539 = vmatmul.mubr.msk.f32.gmra.mxu1 %vm360_vm0, %v441_v12 }
  0x46   : > { %556 = vmatprep.mubr.f32.mxu1 %v3382_v0 }
  0x49   : > { %2540 = vmatmul.mubr.msk.f32.gmra.mxu1 %vm360_vm0, %v442_v13 }
  0x4a   : > { %562 = vmatprep.mubr.f32.mxu1 %v3382_v0 }
  0x4d   : > { %2541 = vmatmul.mubr.msk.f32.gmra.mxu1 %vm360_vm0, %v443_v14 }
  0x5e   : > { %2964 = vset.pattern.permute.xlu1 %v3383_v15 }
  0x68   : > { %2963 = vset.pattern.permute.xlu0 %v3383_v15 }
  0x8e   : > { %450 = vperm.xlu1 %2964, %v444_v16  }
  0x92   : > { %455 = vperm.xlu1 %2964, %v445_v17  }
  0x96   : > { %460 = vperm.xlu1 %2964, %v446_v18  }
  0x98   : > { %357 = vperm.xlu0 %2963, %v354_v19  }
  0x9a   : > { %465 = vperm.xlu1 %2964, %v447_v20  }
  0xaf   : > { %v823_v21 = vpop.trf.xlu0 }
  0xb0   : > { %2845 = vmatprep.mubr.msk.f32.mxu0 %vm360_vm0, %v823_v21  ;;  %v855_v22 = vpop.trf.xlu1 }
  0xb3   : > { %v824_v23 = vpop.trf.xlu0 }
  0xb4   : > { %2846 = vmatmul.mubr.msk.f32.vlgmr.msra.gmra.mxu0 %vm360_vm0, %v824_v23  ;;  %v856_v24 = vpop.trf.xlu1 }
  0xb7   : > { %v825_v25 = vpop.trf.xlu0 }
  0xb8   : > { %2848 = vmatprep.mubr.msk.f32.mxu0 %vm360_vm0, %v825_v25  ;;  %v857_v26 = vpop.trf.xlu1 }
  0xbb   : > { %v826_v27 = vpop.trf.xlu0 }
  0xbc   : > { %2849 = vmatmul.mubr.msk.f32.gmra.mxu0 %vm360_vm0, %v826_v27  ;;  %v858_v28 = vpop.trf.xlu1 }
  0xbf   : > { %v827_v29 = vpop.trf.xlu0 }
  0xc0   : > { %2851 = vmatprep.mubr.msk.f32.mxu0 %vm360_vm0, %v827_v29  ;;  %v859_v30 = vpop.trf.xlu1 }
  0xc1   : > { %2875 = vmatprep.mubr.msk.f32.mxu1 %vm360_vm0, %v859_v30 }
  0xc3   : > { %v828_v31 = vpop.trf.xlu0 }
  0xc4   : > { %2852 = vmatmul.mubr.msk.f32.gmra.mxu0 %vm360_vm0, %v828_v31  ;;  %v860_v32 = vpop.trf.xlu1 }
  0xc5   : > { %2876 = vmatmul.mubr.msk.f32.vlgmr.msra.gmra.mxu1 %vm360_vm0, %v860_v32 }
  0xc7   : > { %v829_v33 = vpop.trf.xlu0 }
  0xc8   : > { %2854 = vmatprep.mubr.msk.f32.mxu0 %vm360_vm0, %v829_v33  ;;  %v861_v34 = vpop.trf.xlu1 }
  0xc9   : > { %2878 = vmatprep.mubr.msk.f32.mxu1 %vm360_vm0, %v861_v34 }
  0xcb   : > { %v830_v35 = vpop.trf.xlu0 }
  0xcc   : > { %2855 = vmatmul.mubr.msk.f32.gmra.mxu0 %vm360_vm0, %v830_v35  ;;  %v862_v36 = vpop.trf.xlu1 }
  0xcd   : > { %2879 = vmatmul.mubr.msk.f32.gmra.mxu1 %vm360_vm0, %v862_v36 }
  0xcf   : > { %v831_v37 = vpop.trf.xlu0 }
  0xd0   : > { %2857 = vmatprep.mubr.msk.f32.mxu0 %vm360_vm0, %v831_v37  ;;  %v863_v38 = vpop.trf.xlu1 }
  0xd1   : > { %2881 = vmatprep.mubr.msk.f32.mxu1 %vm360_vm0, %v863_v38 }
  0xd3   : > { %v832_v39 = vpop.trf.xlu0 }
  0xd4   : > { %2858 = vmatmul.mubr.msk.f32.gmra.mxu0 %vm360_vm0, %v832_v39  ;;  %v864_v40 = vpop.trf.xlu1 }
  0xd5   : > { %2882 = vmatmul.mubr.msk.f32.gmra.mxu1 %vm360_vm0, %v864_v40 }
  0xd7   : > { %v833_v41 = vpop.trf.xlu0 }
  0xd8   : > { %2860 = vmatprep.mubr.msk.f32.mxu0 %vm360_vm0, %v833_v41  ;;  %v865_v42 = vpop.trf.xlu1 }
  0xd9   : > { %2884 = vmatprep.mubr.msk.f32.mxu1 %vm360_vm0, %v865_v42 }
  0xdb   : > { %v834_v43 = vpop.trf.xlu0 }
  0xdc   : > { %2861 = vmatmul.mubr.msk.f32.gmra.mxu0 %vm360_vm0, %v834_v43  ;;  %v866_v44 = vpop.trf.xlu1 }
  0xdd   : > { %2885 = vmatmul.mubr.msk.f32.gmra.mxu1 %vm360_vm0, %v866_v44 }
  0xdf   : > { %v835_v45 = vpop.trf.xlu0 }
  0xe0   : > { %2863 = vmatprep.mubr.msk.f32.mxu0 %vm360_vm0, %v835_v45  ;;  %v867_v46 = vpop.trf.xlu1 }
  0xe1   : > { %2887 = vmatprep.mubr.msk.f32.mxu1 %vm360_vm0, %v867_v46 }
  0xe3   : > { %v836_v47 = vpop.trf.xlu0 }
  0xe4   : > { %2864 = vmatmul.mubr.msk.f32.gmra.mxu0 %vm360_vm0, %v836_v47  ;;  %v868_v48 = vpop.trf.xlu1 }
  0xe5   : > { %2888 = vmatmul.mubr.msk.f32.gmra.mxu1 %vm360_vm0, %v868_v48 }
  0xe7   : > { %v837_v49 = vpop.trf.xlu0 }
  0xe8   : > { %2866 = vmatprep.mubr.msk.f32.mxu0 %vm360_vm0, %v837_v49  ;;  %v869_v50 = vpop.trf.xlu1 }
  0xe9   : > { %2890 = vmatprep.mubr.msk.f32.mxu1 %vm360_vm0, %v869_v50 }
  0xeb   : > { %v838_v51 = vpop.trf.xlu0 }
  0xec   : > { %2867 = vmatmul.mubr.msk.f32.gmra.mxu0 %vm360_vm0, %v838_v51  ;;  %v870_v52 = vpop.trf.xlu1 }
  0xed   : > { %2869 = vmatprep.mubr.msk.f32.mxu0 %vm360_vm0, %v855_v22  ;;  %2891 = vmatmul.mubr.msk.f32.gmra.mxu1 %vm360_vm0, %v870_v52  ;;  %v3622_v22 = vld [vmem:[%s4087_s2] ss:$0 sm:$0xff] }
  0xee   : > { %1373 = vmatprep.mubr.f32.mxu1 %v3382_v0 }
  0xf0   : > { %2870 = vmatmul.mubr.msk.f32.gmra.mxu0 %vm360_vm0, %v856_v24 }
  0xf1   : > { %2872 = vmatprep.mubr.msk.f32.mxu0 %vm360_vm0, %v857_v26 }
  0xf4   : > { %2873 = vmatmul.mubr.msk.f32.gmra.mxu0 %vm360_vm0, %v858_v28 }
  0xfd   : > { %v430_v53 = vpop.f32.mrf.mxu0 }
  0xff   : > { %v432_v54 = vpop.f32.mrf.mxu0 }
 0x101   : > { %v546_v55 = vpop.f32.mrf.mxu1 }
 0x103   : > { %v548_v59 = vpop.f32.mrf.mxu1 }
 0x105   : > { %v552_v63 = vpop.f32.mrf.mxu1 }
 0x107   : > { %v554_v5 = vpop.f32.mrf.mxu1 }
 0x109   : > { %v451_v56 = vpop.permute.xlu1 %450  ;;  %v558_v8 = vpop.f32.mrf.mxu1 }
 0x10a   : > { %v547_v57 = vadd.f32 %v546_v55, %v451_v56  ;;  %v549_v62 = vadd.f32 %v548_v59, %v451_v56 }
 0x10b   : > { %v560_v11 = vpop.f32.mrf.mxu1 }
 0x10c   : > { %v2965_v3 = vpack.i.bf16 %v547_v57, %v549_v62 }
 0x10d   : > { %v456_v4 = vpop.permute.xlu1 %455  ;;  %v564_v14 = vpop.f32.mrf.mxu1 }
 0x10e   : > { %v553_v6 = vadd.f32 %v552_v63, %v456_v4  ;;  %v555_v7 = vadd.f32 %v554_v5, %v456_v4  ;;  %2966 = vxpose.xlu0.b32.start [1/4] (short) %v2965_v3, 128 }
 0x10f   : > { %v566_v17 = vpop.f32.mrf.mxu1 }
 0x110   : > { %v2967_v9 = vpack.i.bf16 %v553_v6, %v555_v7 }
 0x111   : > { %v461_v10 = vpop.permute.xlu1 %460 }
 0x112   : > { %v559_v12 = vadd.f32 %v558_v8, %v461_v10  ;;  %v561_v13 = vadd.f32 %v560_v11, %v461_v10  ;;  %2968 = vxpose.xlu0.b32.cont [2/4] (short) %v2967_v9, 128 }
 0x113   : > { %v358_v58 = vpop.permute.xlu0 %357 }
 0x114   : > { %v431_v60 = vadd.f32 %v430_v53, %v358_v58  ;;  %v433_v61 = vadd.f32 %v432_v54, %v358_v58  ;;  %v2969_v15 = vpack.i.bf16 %v559_v12, %v561_v13 }
 0x115   : > { %v466_v16 = vpop.permute.xlu1 %465 }
 0x116   : > { %v437_v1 = vcombine.low %v431_v60, %v433_v61  ;;  %v2697_v2 = vcombine.low %v433_v61, %v433_v61  ;;  %v565_v18 = vadd.f32 %v564_v14, %v466_v16  ;;  %v567_v19 = vadd.f32 %v566_v17, %v466_v16  ;;  %2970 = vxpose.xlu0.b32.cont [3/4] (short) %v2969_v15, 128 }
 0x118   : > { %2608 = vmatprep.subr.msk.mxu1 %vm1304_vm1, %v2697_v2  ;;  %v2971_v20 = vpack.i.bf16 %v565_v18, %v567_v19 }
 0x119   : > { %2609 = vmatpush1.msk.msra.mxu1 %vm1304_vm1, %v437_v1 }
 0x11a   : > { %2972 = vxpose.xlu0.b32.end [4/4] (short) %v2971_v20, 128 }
 0x174   : > { %v2847_v21 = vpop.f32.mrf.mxu0 }
 0x175   : > { %v1051_v25 = vadd.f32 %v2847_v21, %v3622_v22 }
 0x176   : > { %v1045_v23 = vpop.f32.mrf.mxu0 }
 0x177   : > { %v1046_v24 = vadd.f32 %v3622_v22, %v1045_v23 }
 0x179   : > { %2610 = vmatmul.mubr.msk.f32.vlgmr.msra.gmra.mxu1 %vm1207_vm2, %v1046_v24 }
 0x17a   : > { %1379 = vmatprep.mubr.f32.mxu1 %v3382_v0 }
 0x17c   : > { %v2850_v26 = vpop.f32.mrf.mxu0 }
 0x17d   : > { %2611 = vmatmul.mubr.msk.f32.gmra.mxu1 %vm1207_vm2, %v1051_v25  ;;  %v1061_v29 = vadd.f32 %v2850_v26, %v3622_v22 }
 0x17e   : > { %v1055_v27 = vpop.f32.mrf.mxu0  ;;  %1385 = vmatprep.mubr.f32.mxu1 %v3382_v0 }
 0x17f   : > { %v1056_v28 = vadd.f32 %v3622_v22, %v1055_v27 }
 0x181   : > { %2612 = vmatmul.mubr.msk.f32.gmra.mxu1 %vm1207_vm2, %v1056_v28 }
 0x182   : > { %1391 = vmatprep.mubr.f32.mxu1 %v3382_v0 }
 0x184   : > { %v2853_v30 = vpop.f32.mrf.mxu0 }
 0x185   : > { %2613 = vmatmul.mubr.msk.f32.gmra.mxu1 %vm1207_vm2, %v1061_v29  ;;  %v1071_v33 = vadd.f32 %v2853_v30, %v3622_v22 }
 0x186   : > { %v1065_v31 = vpop.f32.mrf.mxu0  ;;  %1397 = vmatprep.mubr.f32.mxu1 %v3382_v0 }
 0x187   : > { %v1066_v32 = vadd.f32 %v3622_v22, %v1065_v31 }
 0x189   : > { %2614 = vmatmul.mubr.msk.f32.gmra.mxu1 %vm1207_vm2, %v1066_v32 }
 0x18a   : > { %1403 = vmatprep.mubr.f32.mxu1 %v3382_v0  ;;  %v2973_v39 = vpop.trf.xlu0 }
 0x18b   : > { %v2977_v40 = vunpack.i.h.bf16 %v2973_v39  ;;  %v2974_v42 = vunpack.i.l.bf16 %v2973_v39 }
 0x18c   : > { %v2856_v34 = vpop.f32.mrf.mxu0 }
 0x18d   : > { %2615 = vmatmul.mubr.msk.f32.gmra.mxu1 %vm1207_vm2, %v1071_v33  ;;  %v1081_v37 = vadd.f32 %v2856_v34, %v3622_v22  ;;  %v2664_v44 = vpack.c.bf16 %v2977_v40, %v2977_v40  ;;  %v2680_v45 = vpack.c.bf16 %v2974_v42, %v2974_v42 }
 0x18e   : > { %v1075_v35 = vpop.f32.mrf.mxu0  ;;  %1409 = vmatprep.mubr.f32.mxu1 %v3382_v0  ;;  %v2978_v46 = vpop.trf.xlu0 }
 0x18f   : > { %v1076_v36 = vadd.f32 %v3622_v22, %v1075_v35  ;;  %762 = vst.msk [vmem:[#allocation3] sm:$0xf] %vm761_vm3, %v2664_v44  ;;  %v2982_v47 = vunpack.i.h.bf16 %v2978_v46  ;;  %v2979_v48 = vunpack.i.l.bf16 %v2978_v46  ;;  %778 = vst.msk [vmem:[#allocation3 + $0x40] sm:$0xf] %vm761_vm3, %v2680_v45 }
 0x191   : > { %2616 = vmatmul.mubr.msk.f32.gmra.mxu1 %vm1207_vm2, %v1076_v36  ;;  %v2665_v50 = vpack.c.bf16 %v2982_v47, %v2982_v47  ;;  %v2681_v51 = vpack.c.bf16 %v2979_v48, %v2979_v48 }
 0x192   : > { %1415 = vmatprep.mubr.f32.mxu1 %v3382_v0  ;;  %v2983_v53 = vpop.trf.xlu0 }
 0x193   : > { %763 = vst.msk [vmem:[#allocation3 + $0x4] sm:$0xf] %vm761_vm3, %v2665_v50  ;;  %779 = vst.msk [vmem:[#allocation3 + $0x44] sm:$0xf] %vm761_vm3, %v2681_v51  ;;  %v2987_v54 = vunpack.i.h.bf16 %v2983_v53  ;;  %v2984_v56 = vunpack.i.l.bf16 %v2983_v53 }
 0x194   : > { %v2859_v38 = vpop.f32.mrf.mxu0 }
 0x195   : > { %2617 = vmatmul.mubr.msk.f32.gmra.mxu1 %vm1207_vm2, %v1081_v37  ;;  %v1091_v49 = vadd.f32 %v2859_v38, %v3622_v22  ;;  %v2666_v58 = vpack.c.bf16 %v2987_v54, %v2987_v54  ;;  %v2682_v59 = vpack.c.bf16 %v2984_v56, %v2984_v56  ;;  %v2877_v54 = vpop.f32.mrf.mxu1 }
 0x196   : > { %v1085_v41 = vpop.f32.mrf.mxu0  ;;  %1421 = vmatprep.mubr.f32.mxu1 %v3382_v0  ;;  %v2988_v60 = vpop.trf.xlu0 }
 0x197   : > { %v1086_v43 = vadd.f32 %v3622_v22, %v1085_v41  ;;  %764 = vst.msk [vmem:[#allocation3 + $0x8] sm:$0xf] %vm761_vm3, %v2666_v58  ;;  %v2992_v61 = vunpack.i.h.bf16 %v2988_v60  ;;  %v2989_v62 = vunpack.i.l.bf16 %v2988_v60  ;;  %780 = vst.msk [vmem:[#allocation3 + $0x48] sm:$0xf] %vm761_vm3, %v2682_v59 }
 0x199   : > { %2618 = vmatmul.mubr.msk.f32.gmra.mxu1 %vm1207_vm2, %v1086_v43  ;;  %v2667_v1 = vpack.c.bf16 %v2992_v61, %v2992_v61  ;;  %v2683_v2 = vpack.c.bf16 %v2989_v62, %v2989_v62  ;;  %v1145_v61 = vpop.f32.mrf.mxu1 }
 0x19a   : > { %1427 = vmatprep.mubr.f32.mxu1 %v3382_v0  ;;  %v2993_v4 = vpop.trf.xlu0 }
 0x19b   : > { %765 = vst.msk [vmem:[#allocation3 + $0xc] sm:$0xf] %vm761_vm3, %v2667_v1  ;;  %781 = vst.msk [vmem:[#allocation3 + $0x4c] sm:$0xf] %vm761_vm3, %v2683_v2  ;;  %v2997_v5 = vunpack.i.h.bf16 %v2993_v4  ;;  %v2994_v7 = vunpack.i.l.bf16 %v2993_v4  ;;  %v1146_v2 = vadd.f32 %v3622_v22, %v1145_v61 }
 0x19c   : > { %v2862_v52 = vpop.f32.mrf.mxu0 }
 0x19d   : > { %2619 = vmatmul.mubr.msk.f32.gmra.mxu1 %vm1207_vm2, %v1091_v49  ;;  %v1101_v63 = vadd.f32 %v2862_v52, %v3622_v22  ;;  %v2668_v9 = vpack.c.bf16 %v2997_v5, %v2997_v5  ;;  %v2684_v10 = vpack.c.bf16 %v2994_v7, %v2994_v7  ;;  %v2880_v5 = vpop.f32.mrf.mxu1 }
 0x19e   : > { %v1095_v55 = vpop.f32.mrf.mxu0  ;;  %1433 = vmatprep.mubr.f32.mxu1 %v3382_v0  ;;  %v2998_v11 = vpop.trf.xlu0 }
 0x19f   : > { %v1096_v57 = vadd.f32 %v3622_v22, %v1095_v55  ;;  %766 = vst.msk [vmem:[#allocation3 + $0x10] sm:$0xf] %vm761_vm3, %v2668_v9  ;;  %v3002_v12 = vunpack.i.h.bf16 %v2998_v11  ;;  %v2999_v13 = vunpack.i.l.bf16 %v2998_v11  ;;  %782 = vst.msk [vmem:[#allocation3 + $0x50] sm:$0xf] %vm761_vm3, %v2684_v10  ;;  %v1151_v9 = vadd.f32 %v2877_v54, %v3622_v22 }
 0x1a1   : > { %2620 = vmatmul.mubr.msk.f32.gmra.mxu1 %vm1207_vm2, %v1096_v57  ;;  %v2669_v15 = vpack.c.bf16 %v3002_v12, %v3002_v12  ;;  %v2685_v16 = vpack.c.bf16 %v2999_v13, %v2999_v13  ;;  %v1155_v12 = vpop.f32.mrf.mxu1 }
 0x1a2   : > { %1439 = vmatprep.mubr.f32.mxu1 %v3382_v0  ;;  %v3003_v18 = vpop.trf.xlu0  ;;  %v3065_v54 = vld [vmem:[#allocation3 + $0x48] sm:$0xff]  }
 0x1a3   : > { %767 = vst.msk [vmem:[#allocation3 + $0x14] sm:$0xf] %vm761_vm3, %v2669_v15  ;;  %783 = vst.msk [vmem:[#allocation3 + $0x54] sm:$0xf] %vm761_vm3, %v2685_v16  ;;  %v3007_v19 = vunpack.i.h.bf16 %v3003_v18  ;;  %v3004_v21 = vunpack.i.l.bf16 %v3003_v18  ;;  %v1156_v16 = vadd.f32 %v3622_v22, %v1155_v12 }
 0x1a4   : > { %v2865_v3 = vpop.f32.mrf.mxu0 }
 0x1a5   : > { %2621 = vmatmul.mubr.msk.f32.gmra.mxu1 %vm1207_vm2, %v1101_v63  ;;  %v1111_v14 = vadd.f32 %v2865_v3, %v3622_v22  ;;  %v2670_v24 = vpack.c.bf16 %v3007_v19, %v3007_v19  ;;  %v2686_v26 = vpack.c.bf16 %v3004_v21, %v3004_v21  ;;  %v2883_v19 = vpop.f32.mrf.mxu1 }
 0x1a6   : > { %v1105_v6 = vpop.f32.mrf.mxu0  ;;  %1445 = vmatprep.mubr.f32.mxu1 %v3382_v0  ;;  %v3008_v27 = vpop.trf.xlu0 }
 0x1a7   : > { %v1106_v8 = vadd.f32 %v3622_v22, %v1105_v6  ;;  %768 = vst.msk [vmem:[#allocation3 + $0x18] sm:$0xf] %vm761_vm3, %v2670_v24  ;;  %v3012_v28 = vunpack.i.h.bf16 %v3008_v27  ;;  %784 = vst.msk [vmem:[#allocation3 + $0x58] sm:$0xf] %vm761_vm3, %v2686_v26  ;;  %v3009_v29 = vunpack.i.l.bf16 %v3008_v27  ;;  %v1161_v24 = vadd.f32 %v2880_v5, %v3622_v22  ;;  %v1165_v27 = vpop.f32.mrf.mxu1 }
 0x1a9   : > { %2622 = vmatmul.mubr.msk.f32.gmra.mxu1 %vm1207_vm2, %v1106_v8  ;;  %v2671_v31 = vpack.c.bf16 %v3012_v28, %v3012_v28  ;;  %v2687_v33 = vpack.c.bf16 %v3009_v29, %v3009_v29  ;;  %v1166_v28 = vadd.f32 %v3622_v22, %v1165_v27  ;;  %v2886_v29 = vpop.f32.mrf.mxu1 }
 0x1aa   : > { %1451 = vmatprep.mubr.f32.mxu1 %v3382_v0  ;;  %v3013_v34 = vpop.trf.xlu0 }
 0x1ab   : > { %769 = vst.msk [vmem:[#allocation3 + $0x1c] sm:$0xf] %vm761_vm3, %v2671_v31  ;;  %v3017_v35 = vunpack.i.h.bf16 %v3013_v34  ;;  %785 = vst.msk [vmem:[#allocation3 + $0x5c] sm:$0xf] %vm761_vm3, %v2687_v33  ;;  %v3014_v36 = vunpack.i.l.bf16 %v3013_v34  ;;  %v1175_v31 = vpop.f32.mrf.mxu1 }
 0x1ac   : > { %v2868_v17 = vpop.f32.mrf.mxu0 }
 0x1ad   : > { %2623 = vmatmul.mubr.msk.f32.gmra.mxu1 %vm1207_vm2, %v1111_v14  ;;  %v1121_v30 = vadd.f32 %v2868_v17, %v3622_v22  ;;  %v2672_v38 = vpack.c.bf16 %v3017_v35, %v3017_v35  ;;  %v2688_v40 = vpack.c.bf16 %v3014_v36, %v3014_v36  ;;  %v2889_v35 = vpop.f32.mrf.mxu1  ;;  %v1181_v36 = vadd.f32 %v2886_v29, %v3622_v22 }
 0x1ae   : > { %v1115_v20 = vpop.f32.mrf.mxu0  ;;  %1457 = vmatprep.mubr.f32.mxu1 %v3382_v0  ;;  %v3018_v41 = vpop.trf.xlu0 }
 0x1af   : > { %v1116_v23 = vadd.f32 %v3622_v22, %v1115_v20  ;;  %770 = vst.msk [vmem:[#allocation3 + $0x20] sm:$0xf] %vm761_vm3, %v2672_v38  ;;  %v3022_v42 = vunpack.i.h.bf16 %v3018_v41  ;;  %v3019_v43 = vunpack.i.l.bf16 %v3018_v41  ;;  %786 = vst.msk [vmem:[#allocation3 + $0x60] sm:$0xf] %vm761_vm3, %v2688_v40 }
 0x1b0   : > { %v2871_v25 = vpop.f32.mrf.mxu0 }
 0x1b1   : > { %2624 = vmatmul.mubr.msk.f32.gmra.mxu1 %vm1207_vm2, %v1116_v23  ;;  %v1131_v44 = vadd.f32 %v2871_v25, %v3622_v22  ;;  %v2673_v45 = vpack.c.bf16 %v3022_v42, %v3022_v42  ;;  %v2689_v46 = vpack.c.bf16 %v3019_v43, %v3019_v43 }
 0x1b2   : > { %1463 = vmatprep.mubr.f32.mxu1 %v3382_v0  ;;  %v1125_v32 = vpop.f32.mrf.mxu0  ;;  %v3023_v48 = vpop.trf.xlu0 }
 0x1b3   : > { %v1126_v37 = vadd.f32 %v3622_v22, %v1125_v32  ;;  %771 = vst.msk [vmem:[#allocation3 + $0x24] sm:$0xf] %vm761_vm3, %v2673_v45  ;;  %787 = vst.msk [vmem:[#allocation3 + $0x64] sm:$0xf] %vm761_vm3, %v2689_v46  ;;  %v3027_v49 = vunpack.i.h.bf16 %v3023_v48  ;;  %v3024_v50 = vunpack.i.l.bf16 %v3023_v48  ;;  %v1176_v32 = vadd.f32 %v3622_v22, %v1175_v31 }
 0x1b4   : > { %v2874_v39 = vpop.f32.mrf.mxu0 }
 0x1b5   : > { %2625 = vmatmul.mubr.msk.f32.gmra.mxu1 %vm1207_vm2, %v1121_v30  ;;  %v2674_v52 = vpack.c.bf16 %v3027_v49, %v3027_v49  ;;  %v2690_v53 = vpack.c.bf16 %v3024_v50, %v3024_v50  ;;  %v1141_v58 = vadd.f32 %v2874_v39, %v3622_v22  ;;  %v1171_v30 = vadd.f32 %v2883_v19, %v3622_v22  ;;  %v1185_v39 = vpop.f32.mrf.mxu1  ;;  %v3061_v49 = vld [vmem:[#allocation3 + $0x58] sm:$0xff]  }
 0x1b6   : > { %1469 = vmatprep.mubr.f32.mxu1 %v3382_v0  ;;  %v1135_v47 = vpop.f32.mrf.mxu0  ;;  %v3028_v55 = vpop.trf.xlu0  ;;  %v1186_v40 = vadd.f32 %v3622_v22, %v1185_v39  ;;  %v3062_v50 = vld [vmem:[#allocation3 + $0x18] sm:$0xff]  }
 0x1b7   : > { %v1136_v51 = vadd.f32 %v3622_v22, %v1135_v47  ;;  %772 = vst.msk [vmem:[#allocation3 + $0x28] sm:$0xf] %vm761_vm3, %v2674_v52  ;;  %788 = vst.msk [vmem:[#allocation3 + $0x68] sm:$0xf] %vm761_vm3, %v2690_v53  ;;  %v3032_v56 = vunpack.i.h.bf16 %v3028_v55  ;;  %v3029_v57 = vunpack.i.l.bf16 %v3028_v55  ;;  %v2892_v43 = vpop.f32.mrf.mxu1  ;;  %v3063_v52 = vld [vmem:[#allocation3 + $0x50] sm:$0xff]   ;;  %v3066_v55 = vld [vmem:[#allocation3 + $0x8] sm:$0xff]  }
 0x1b8   : > { %v3064_v53 = vld [vmem:[#allocation3 + $0x10] sm:$0xff]  }
 0x1b9   : > { %2626 = vmatmul.mubr.msk.f32.gmra.mxu1 %vm1207_vm2, %v1126_v37  ;;  %v2675_v59 = vpack.c.bf16 %v3032_v56, %v3032_v56  ;;  %v2691_v60 = vpack.c.bf16 %v3029_v57, %v3029_v57  ;;  %v1195_v47 = vpop.f32.mrf.mxu1  ;;  %v3067_v56 = vld [vmem:[#allocation3 + $0x40] sm:$0xff]  }
 0x1ba   : > { %1475 = vmatprep.mubr.f32.mxu1 %v3382_v0  ;;  %v3033_v62 = vpop.trf.xlu0  ;;  %v3059_v45 = vld [vmem:[#allocation3 + $0x60] sm:$0xff]   ;;  %v1196_v48 = vadd.f32 %v3622_v22, %v1195_v47 }
 0x1bb   : > { %773 = vst.msk [vmem:[#allocation3 + $0x2c] sm:$0xf] %vm761_vm3, %v2675_v59  ;;  %789 = vst.msk [vmem:[#allocation3 + $0x6c] sm:$0xf] %vm761_vm3, %v2691_v60  ;;  %v3037_v63 = vunpack.i.h.bf16 %v3033_v62  ;;  %v3034_v1 = vunpack.i.l.bf16 %v3033_v62  ;;  %v3060_v46 = vld [vmem:[#allocation3 + $0x20] sm:$0xff]  }
 0x1bc   : > { %v3068_v57 = vld [vmem:[#allocation3] sm:$0xff]  }
 0x1bd   : > { %2627 = vmatmul.mubr.msk.f32.gmra.mxu1 %vm1207_vm2, %v1131_v44  ;;  %v2676_v3 = vpack.c.bf16 %v3037_v63, %v3037_v63  ;;  %v2692_v4 = vpack.c.bf16 %v3034_v1, %v3034_v1  ;;  %v1191_v44 = vadd.f32 %v2889_v35, %v3622_v22 }
 0x1be   : > { %1481 = vmatprep.mubr.f32.mxu1 %v3382_v0  ;;  %v3038_v6 = vpop.trf.xlu0 }
 0x1bf   : > { %774 = vst.msk [vmem:[#allocation3 + $0x30] sm:$0xf] %vm761_vm3, %v2676_v3  ;;  %790 = vst.msk [vmem:[#allocation3 + $0x70] sm:$0xf] %vm761_vm3, %v2692_v4  ;;  %v3042_v7 = vunpack.i.h.bf16 %v3038_v6  ;;  %v3039_v8 = vunpack.i.l.bf16 %v3038_v6 }
 0x1c1   : > { %2628 = vmatmul.mubr.msk.f32.gmra.mxu1 %vm1207_vm2, %v1136_v51  ;;  %v2677_v10 = vpack.c.bf16 %v3042_v7, %v3042_v7  ;;  %v2693_v11 = vpack.c.bf16 %v3039_v8, %v3039_v8  ;;  %v1201_v51 = vadd.f32 %v2892_v43, %v3622_v22 }
 0x1c2   : > { %1487 = vmatprep.mubr.f32.mxu1 %v3382_v0  ;;  %v3043_v13 = vpop.trf.xlu0  ;;  %v3057_v41 = vld [vmem:[#allocation3 + $0x68] sm:$0xff]  }
 0x1c3   : > { %775 = vst.msk [vmem:[#allocation3 + $0x34] sm:$0xf] %vm761_vm3, %v2677_v10  ;;  %791 = vst.msk [vmem:[#allocation3 + $0x74] sm:$0xf] %vm761_vm3, %v2693_v11  ;;  %v3047_v14 = vunpack.i.h.bf16 %v3043_v13  ;;  %v3044_v15 = vunpack.i.l.bf16 %v3043_v13  ;;  %v3058_v42 = vld [vmem:[#allocation3 + $0x28] sm:$0xff]  }
 0x1c5   : > { %2629 = vmatmul.mubr.msk.f32.gmra.mxu1 %vm1207_vm2, %v1141_v58  ;;  %v2678_v17 = vpack.c.bf16 %v3047_v14, %v3047_v14  ;;  %v2694_v18 = vpack.c.bf16 %v3044_v15, %v3044_v15 }
 0x1c6   : > { %1493 = vmatprep.mubr.f32.mxu1 %v3382_v0  ;;  %v3048_v20 = vpop.trf.xlu0 }
 0x1c7   : > { %776 = vst.msk [vmem:[#allocation3 + $0x38] sm:$0xf] %vm761_vm3, %v2678_v17  ;;  %792 = vst.msk [vmem:[#allocation3 + $0x78] sm:$0xf] %vm761_vm3, %v2694_v18  ;;  %v3052_v21 = vunpack.i.h.bf16 %v3048_v20  ;;  %v3049_v23 = vunpack.i.l.bf16 %v3048_v20 }
 0x1c9   : > { %2630 = vmatmul.mubr.msk.f32.gmra.mxu1 %vm1207_vm2, %v1146_v2  ;;  %v2679_v25 = vpack.c.bf16 %v3052_v21, %v3052_v21  ;;  %v2695_v26 = vpack.c.bf16 %v3049_v23, %v3049_v23 }
 0x1ca   : > { %1499 = vmatprep.mubr.f32.mxu1 %v3382_v0  ;;  %v3055_v37 = vld [vmem:[#allocation3 + $0x70] sm:$0xff]  }
 0x1cb   : > { %777 = vst.msk [vmem:[#allocation3 + $0x3c] sm:$0xf] %vm761_vm3, %v2679_v25  ;;  %793 = vst.msk [vmem:[#allocation3 + $0x7c] sm:$0xf] %vm761_vm3, %v2695_v26  ;;  %v3056_v38 = vld [vmem:[#allocation3 + $0x30] sm:$0xff]  }
 0x1cd   : > { %2631 = vmatmul.mubr.msk.f32.gmra.mxu1 %vm1207_vm2, %v1151_v9 }
 0x1ce   : > { %1505 = vmatprep.mubr.f32.mxu1 %v3382_v0 }
 0x1d1   : > { %2632 = vmatmul.mubr.msk.f32.gmra.mxu1 %vm1207_vm2, %v1156_v16 }
 0x1d2   : > { %1511 = vmatprep.mubr.f32.mxu1 %v3382_v0  ;;  %v3053_v33 = vld [vmem:[#allocation3 + $0x78] sm:$0xff]  }
 0x1d3   : > { %v3054_v34 = vld [vmem:[#allocation3 + $0x38] sm:$0xff]   ;;  %2731 = vmatprep.subr.bf16.mxu0 %v3053_v33 }
 0x1d4   : > { %2732 = vmatpush3.bf16.msra.mxu0 %v3054_v34 }
 0x1d5   : > { %2633 = vmatmul.mubr.msk.f32.gmra.mxu1 %vm1207_vm2, %v1161_v24  ;;  %2733 = vmatprep.subr.bf16.mxu0 %v3055_v37 }
 0x1d6   : > { %1517 = vmatprep.mubr.f32.mxu1 %v3382_v0 }
 0x1d8   : > { %2734 = vmatpush3.bf16.msra.mxu0 %v3056_v38 }
 0x1d9   : > { %2634 = vmatmul.mubr.msk.f32.gmra.mxu1 %vm1207_vm2, %v1166_v28  ;;  %2735 = vmatprep.subr.bf16.mxu0 %v3057_v41 }
 0x1da   : > { %1523 = vmatprep.mubr.f32.mxu1 %v3382_v0 }
 0x1dc   : > { %2736 = vmatpush3.bf16.msra.mxu0 %v3058_v42 }
 0x1dd   : > { %2635 = vmatmul.mubr.msk.f32.gmra.mxu1 %vm1207_vm2, %v1171_v30  ;;  %2737 = vmatprep.subr.bf16.mxu0 %v3059_v45 }
 0x1de   : > { %1529 = vmatprep.mubr.f32.mxu1 %v3382_v0 }
 0x1e0   : > { %2738 = vmatpush3.bf16.msra.mxu0 %v3060_v46 }
 0x1e1   : > { %2636 = vmatmul.mubr.msk.f32.gmra.mxu1 %vm1207_vm2, %v1176_v32  ;;  %2739 = vmatprep.subr.bf16.mxu0 %v3061_v49 }
 0x1e2   : > { %1535 = vmatprep.mubr.f32.mxu1 %v3382_v0 }
 0x1e4   : > { %2740 = vmatpush3.bf16.msra.mxu0 %v3062_v50 }
 0x1e5   : > { %2637 = vmatmul.mubr.msk.f32.gmra.mxu1 %vm1207_vm2, %v1181_v36  ;;  %2741 = vmatprep.subr.bf16.mxu0 %v3063_v52 }
 0x1e6   : > { %1541 = vmatprep.mubr.f32.mxu1 %v3382_v0 }
 0x1e8   : > { %2742 = vmatpush3.bf16.msra.mxu0 %v3064_v53 }
 0x1e9   : > { %2638 = vmatmul.mubr.msk.f32.gmra.mxu1 %vm1207_vm2, %v1186_v40  ;;  %2743 = vmatprep.subr.bf16.mxu0 %v3065_v54 }
 0x1ea   : > { %1547 = vmatprep.mubr.f32.mxu1 %v3382_v0 }
 0x1ec   : > { %2744 = vmatpush3.bf16.msra.mxu0 %v3066_v55 }
 0x1ed   : > { %2639 = vmatmul.mubr.msk.f32.gmra.mxu1 %vm1207_vm2, %v1191_v44  ;;  %2745 = vmatprep.subr.bf16.mxu0 %v3067_v56 }
 0x1ee   : > { %1553 = vmatprep.mubr.f32.mxu1 %v3382_v0 }
 0x1f0   : > { %2746 = vmatpush3.bf16.msra.mxu0 %v3068_v57 }
 0x1f1   : > { %2640 = vmatmul.mubr.msk.f32.gmra.mxu1 %vm1207_vm2, %v1196_v48 }
 0x1f2   : > { %1559 = vmatprep.mubr.f32.mxu1 %v3382_v0 }
 0x1f5   : > { %2641 = vmatmul.mubr.msk.f32.gmra.mxu1 %vm1207_vm2, %v1201_v51 }
 0x239   : > { %v3751_v58 = vpop.f32.mrf.mxu1 }
 0x23b   : > { %v3753_v0 = vpop.f32.mrf.mxu1 }
 0x23c   : > { %v1566_v22 = vmax.f32 %v3751_v58, %v3753_v0 }
 0x23d   : > { %v3757_v59 = vpop.f32.mrf.mxu1 }
 0x23e   : > { %1567 = vmax.xlane.f32.xlu1 %v1566_v22 }
 0x23f   : > { %v3759_v60 = vpop.f32.mrf.mxu1 }
 0x240   : > { %v1569_v61 = vmax.f32 %v3757_v59, %v3759_v60 }
 0x241   : > { %v3763_v62 = vpop.f32.mrf.mxu1 }
 0x242   : > { %1570 = vmax.xlane.f32.xlu1 %v1569_v61 }
 0x243   : > { %v3765_v63 = vpop.f32.mrf.mxu1 }
 0x244   : > { %v1572_v1 = vmax.f32 %v3763_v62, %v3765_v63 }
 0x245   : > { %v3769_v2 = vpop.f32.mrf.mxu1 }
 0x246   : > { %1573 = vmax.xlane.f32.xlu1 %v1572_v1 }
 0x247   : > { %v3771_v3 = vpop.f32.mrf.mxu1 }
 0x248   : > { %v1575_v4 = vmax.f32 %v3769_v2, %v3771_v3 }
 0x249   : > { %v3775_v5 = vpop.f32.mrf.mxu1 }
 0x24a   : > { %1576 = vmax.xlane.f32.xlu0 %v1575_v4 }
 0x24b   : > { %v3777_v6 = vpop.f32.mrf.mxu1 }
 0x24c   : > { %v1578_v7 = vmax.f32 %v3775_v5, %v3777_v6 }
 0x24d   : > { %v3781_v8 = vpop.f32.mrf.mxu1 }
 0x24e   : > { %1579 = vmax.xlane.f32.xlu1 %v1578_v7 }
 0x24f   : > { %v3783_v9 = vpop.f32.mrf.mxu1 }
 0x250   : > { %v1581_v10 = vmax.f32 %v3781_v8, %v3783_v9 }
 0x251   : > { %v3787_v11 = vpop.f32.mrf.mxu1 }
 0x252   : > { %1582 = vmax.xlane.f32.xlu1 %v1581_v10 }
 0x253   : > { %v3789_v12 = vpop.f32.mrf.mxu1 }
 0x254   : > { %v1584_v13 = vmax.f32 %v3787_v11, %v3789_v12 }
 0x255   : > { %v3793_v14 = vpop.f32.mrf.mxu1 }
 0x256   : > { %1585 = vmax.xlane.f32.xlu1 %v1584_v13 }
 0x257   : > { %v3795_v15 = vpop.f32.mrf.mxu1 }
 0x258   : > { %v1587_v16 = vmax.f32 %v3793_v14, %v3795_v15 }
 0x259   : > { %v3799_v17 = vpop.f32.mrf.mxu1 }
 0x25a   : > { %1588 = vmax.xlane.f32.xlu1 %v1587_v16 }
 0x25b   : > { %v3801_v18 = vpop.f32.mrf.mxu1 }
 0x25c   : > { %v1590_v19 = vmax.f32 %v3799_v17, %v3801_v18 }
 0x25d   : > { %v3805_v20 = vpop.f32.mrf.mxu1 }
 0x25e   : > { %1591 = vmax.xlane.f32.xlu1 %v1590_v19 }
 0x25f   : > { %v3807_v21 = vpop.f32.mrf.mxu1 }
 0x260   : > { %v1593_v23 = vmax.f32 %v3805_v20, %v3807_v21 }
 0x261   : > { %v3811_v24 = vpop.f32.mrf.mxu1 }
 0x262   : > { %1594 = vmax.xlane.f32.xlu1 %v1593_v23 }
 0x263   : > { %v3813_v25 = vpop.f32.mrf.mxu1 }
 0x264   : > { %v1596_v26 = vmax.f32 %v3811_v24, %v3813_v25 }
 0x265   : > { %v3817_v27 = vpop.f32.mrf.mxu1 }
 0x266   : > { %1597 = vmax.xlane.f32.xlu1 %v1596_v26 }
 0x267   : > { %v3819_v28 = vpop.f32.mrf.mxu1 }
 0x268   : > { %v1599_v29 = vmax.f32 %v3817_v27, %v3819_v28 }
 0x269   : > { %v3823_v30 = vpop.f32.mrf.mxu1 }
 0x26a   : > { %1600 = vmax.xlane.f32.xlu1 %v1599_v29 }
 0x26b   : > { %v3825_v31 = vpop.f32.mrf.mxu1 }
 0x26c   : > { %v1602_v32 = vmax.f32 %v3823_v30, %v3825_v31 }
 0x26d   : > { %v3829_v33 = vpop.f32.mrf.mxu1 }
 0x26e   : > { %1603 = vmax.xlane.f32.xlu1 %v1602_v32 }
 0x26f   : > { %v3831_v34 = vpop.f32.mrf.mxu1 }
 0x270   : > { %v1605_v35 = vmax.f32 %v3829_v33, %v3831_v34 }
 0x271   : > { %v3835_v36 = vpop.f32.mrf.mxu1 }
 0x272   : > { %1606 = vmax.xlane.f32.xlu1 %v1605_v35 }
 0x273   : > { %v3837_v37 = vpop.f32.mrf.mxu1 }
 0x274   : > { %v1608_v38 = vmax.f32 %v3835_v36, %v3837_v37 }
 0x275   : > { %v3841_v39 = vpop.f32.mrf.mxu1 }
 0x276   : > { %1609 = vmax.xlane.f32.xlu1 %v1608_v38 }
 0x277   : > { %v3843_v40 = vpop.f32.mrf.mxu1 }
 0x278   : > { %v1611_v41 = vmax.f32 %v3841_v39, %v3843_v40 }
 0x279   : > { %v3847_v42 = vpop.f32.mrf.mxu1 }
 0x27a   : > { %1612 = vmax.xlane.f32.xlu1 %v1611_v41 }
 0x27b   : > { %v3849_v43 = vpop.f32.mrf.mxu1 }
 0x27c   : > { %v1614_v44 = vmax.f32 %v3847_v42, %v3849_v43 }
 0x27d   : > { %v3853_v45 = vpop.f32.mrf.mxu1 }
 0x27e   : > { %1615 = vmax.xlane.f32.xlu1 %v1614_v44 }
 0x27f   : > { %v3855_v46 = vpop.f32.mrf.mxu1 }
 0x280   : > { %v1617_v47 = vmax.f32 %v3853_v45, %v3855_v46 }
 0x281   : > { %v3859_v48 = vpop.f32.mrf.mxu1 }
 0x282   : > { %1618 = vmax.xlane.f32.xlu1 %v1617_v47 }
 0x283   : > { %v3861_v49 = vpop.f32.mrf.mxu1 }
 0x284   : > { %v1620_v50 = vmax.f32 %v3859_v48, %v3861_v49 }
 0x285   : > { %v3865_v51 = vpop.f32.mrf.mxu1 }
 0x286   : > { %1621 = vmax.xlane.f32.xlu1 %v1620_v50 }
 0x287   : > { %v3867_v52 = vpop.f32.mrf.mxu1 }
 0x288   : > { %v1623_v53 = vmax.f32 %v3865_v51, %v3867_v52 }
 0x289   : > { %v3871_v54 = vpop.f32.mrf.mxu1 }
 0x28a   : > { %1624 = vmax.xlane.f32.xlu1 %v1623_v53 }
 0x28b   : > { %v3873_v55 = vpop.f32.mrf.mxu1 }
 0x28c   : > { %v1626_v56 = vmax.f32 %v3871_v54, %v3873_v55 }
 0x28d   : > { %v3877_v57 = vpop.f32.mrf.mxu1 }
 0x28e   : > { %1627 = vmax.xlane.f32.xlu1 %v1626_v56 }
 0x28f   : > { %v3879_v22 = vpop.f32.mrf.mxu1 }
 0x290   : > { %v1629_v61 = vmax.f32 %v3877_v57, %v3879_v22 }
 0x291   : > { %v3883_v1 = vpop.f32.mrf.mxu1 }
 0x292   : > { %1630 = vmax.xlane.f32.xlu1 %v1629_v61 }
 0x293   : > { %v3885_v4 = vpop.f32.mrf.mxu1 }
 0x294   : > { %v1632_v7 = vmax.f32 %v3883_v1, %v3885_v4 }
 0x295   : > { %v3889_v10 = vpop.f32.mrf.mxu1 }
 0x296   : > { %1633 = vmax.xlane.f32.xlu1 %v1632_v7 }
 0x297   : > { %v3891_v13 = vpop.f32.mrf.mxu1 }
 0x298   : > { %v1635_v16 = vmax.f32 %v3889_v10, %v3891_v13 }
 0x299   : > { %v3895_v19 = vpop.f32.mrf.mxu1 }
 0x29a   : > { %1636 = vmax.xlane.f32.xlu1 %v1635_v16 }
 0x29b   : > { %v3897_v23 = vpop.f32.mrf.mxu1 }
 0x29c   : > { %v1638_v26 = vmax.f32 %v3895_v19, %v3897_v23 }
 0x29d   : > { %v3901_v29 = vpop.f32.mrf.mxu1 }
 0x29e   : > { %4114 = vst [vmem:[#allocation12_spill] sm:$0xff] %v3901_v29  ;;  %1639 = vmax.xlane.f32.xlu1 %v1638_v26 }
 0x29f   : > { %v3903_v32 = vpop.f32.mrf.mxu1 }
 0x2a0   : > { %4115 = vst [vmem:[#allocation13_spill] sm:$0xff] %v3903_v32  ;;  %v1641_v35 = vmax.f32 %v3901_v29, %v3903_v32 }
 0x2a1   : > { %v3907_v38 = vpop.f32.mrf.mxu1 }
 0x2a2   : > { %4116 = vst [vmem:[#allocation14_spill] sm:$0xff] %v3907_v38  ;;  %1642 = vmax.xlane.f32.xlu1 %v1641_v35 }
 0x2a3   : > { %v3909_v41 = vpop.f32.mrf.mxu1 }
 0x2a4   : > { %4117 = vst [vmem:[#allocation15_spill] sm:$0xff] %v3909_v41  ;;  %v1644_v44 = vmax.f32 %v3907_v38, %v3909_v41 }
 0x2a5   : > { %v3913_v47 = vpop.f32.mrf.mxu1 }
 0x2a6   : > { %4118 = vst [vmem:[#allocation16_spill] sm:$0xff] %v3913_v47  ;;  %1645 = vmax.xlane.f32.xlu1 %v1644_v44 }
 0x2a7   : > { %v3915_v50 = vpop.f32.mrf.mxu1 }
 0x2a8   : > { %4119 = vst [vmem:[#allocation17_spill] sm:$0xff] %v3915_v50  ;;  %v1647_v53 = vmax.f32 %v3913_v47, %v3915_v50 }
 0x2a9   : > { %v3919_v56 = vpop.f32.mrf.mxu1 }
 0x2aa   : > { %4120 = vst [vmem:[#allocation18_spill] sm:$0xff] %v3919_v56  ;;  %1648 = vmax.xlane.f32.xlu0 %v1647_v53 }
 0x2ab   : > { %v3921_v61 = vpop.f32.mrf.mxu1 }
 0x2ac   : > { %4121 = vst [vmem:[#allocation19_spill] sm:$0xff] %v3921_v61  ;;  %v1650_v7 = vmax.f32 %v3919_v56, %v3921_v61 }
 0x2ad   : > { %v3925_v16 = vpop.f32.mrf.mxu1 }
 0x2ae   : > { %4122 = vst [vmem:[#allocation20_spill] sm:$0xff] %v3925_v16  ;;  %1651 = vmax.xlane.f32.xlu1 %v1650_v7 }
 0x2af   : > { %v3927_v26 = vpop.f32.mrf.mxu1 }
 0x2b0   : > { %4123 = vst [vmem:[#allocation21_spill] sm:$0xff] %v3927_v26  ;;  %v1653_v35 = vmax.f32 %v3925_v16, %v3927_v26 }
 0x2b1   : > { %v3931_v44 = vpop.f32.mrf.mxu1 }
 0x2b2   : > { %4124 = vst [vmem:[#allocation22_spill] sm:$0xff] %v3931_v44  ;;  %1654 = vmax.xlane.f32.xlu0 %v1653_v35 }
 0x2b3   : > { %v3933_v50 = vpop.f32.mrf.mxu1 }
 0x2b4   : > { %4125 = vst [vmem:[#allocation23_spill] sm:$0xff] %v3933_v50  ;;  %v1656_v53 = vmax.f32 %v3931_v44, %v3933_v50 }
 0x2b5   : > { %v3937_v47 = vpop.f32.mrf.mxu1 }
 0x2b6   : > { %1657 = vmax.xlane.f32.xlu1 %v1656_v53 }
 0x2b7   : > { %v3939_v61 = vpop.f32.mrf.mxu1 }
 0x2b8   : > { %4126 = vst [vmem:[#allocation24_spill] sm:$0xff] %v3939_v61  ;;  %v1659_v7 = vmax.f32 %v3937_v47, %v3939_v61 }
 0x2ba   : > { %1660 = vmax.xlane.f32.xlu0 %v1659_v7 }
 0x2c7   : > { %v1568_v56 = vpop.xlane.xlu1 %1567 }
 0x2c8   : > { %v1662_v26 = vsub.f32 %v3751_v58, %v1568_v56  ;;  %v1663_v16 = vsub.f32 %v3753_v0, %v1568_v56 }
 0x2ca   : > { %v1726_v35 = vmul.f32 1.442695, %v1662_v26  ;;  %v1728_v41 = vmul.f32 1.442695, %v1663_v16 }
 0x2cb   : > { %v1571_v38 = vpop.xlane.xlu1 %1570 }
 0x2cc   : > { %3069 = vpow2.f32 %v1726_v35  ;;  %v1664_v50 = vsub.f32 %v3757_v59, %v1571_v38  ;;  %v1665_v44 = vsub.f32 %v3759_v60, %v1571_v38 }
 0x2cd   : > { %3071 = vpow2.f32 %v1728_v41 }
 0x2ce   : > { %v1730_v53 = vmul.f32 1.442695, %v1664_v50  ;;  %v1732_v32 = vmul.f32 1.442695, %v1665_v44 }
 0x2cf   : > { %v1574_v29 = vpop.xlane.xlu1 %1573 }
 0x2d0   : > { %3073 = vpow2.f32 %v1730_v53  ;;  %v1666_v7 = vsub.f32 %v3763_v62, %v1574_v29  ;;  %v1667_v61 = vsub.f32 %v3765_v63, %v1574_v29 }
 0x2d1   : > { %3075 = vpow2.f32 %v1732_v32 }
 0x2d2   : > { %v1734_v58 = vmul.f32 1.442695, %v1666_v7  ;;  %v1736_v0 = vmul.f32 1.442695, %v1667_v61 }
 0x2d3   : > { %v1577_v56 = vpop.xlane.xlu0 %1576 }
 0x2d4   : > { %3077 = vpow2.f32 %v1734_v58  ;;  %v1668_v16 = vsub.f32 %v3769_v2, %v1577_v56  ;;  %v1669_v59 = vsub.f32 %v3771_v3, %v1577_v56 }
 0x2d5   : > { %3079 = vpow2.f32 %v1736_v0 }
 0x2d6   : > { %v1738_v60 = vmul.f32 1.442695, %v1668_v16  ;;  %v1740_v38 = vmul.f32 1.442695, %v1669_v59 }
 0x2d7   : > { %v1580_v41 = vpop.xlane.xlu1 %1579 }
 0x2d8   : > { %3081 = vpow2.f32 %v1738_v60  ;;  %v1670_v50 = vsub.f32 %v3775_v5, %v1580_v41  ;;  %v1671_v62 = vsub.f32 %v3777_v6, %v1580_v41 }
 0x2d9   : > { %v3070_v26 = vpop.eup %3069  ;;  %3083 = vpow2.f32 %v1740_v38 }
 0x2da   : > { %v3072_v63 = vpop.eup %3071  ;;  %v1742_v29 = vmul.f32 1.442695, %v1670_v50  ;;  %v1744_v32 = vmul.f32 1.442695, %v1671_v62 }
 0x2db   : > { %v1583_v61 = vpop.xlane.xlu1 %1582  ;;  %v1854_v44 = vadd.f32 %v3072_v63, %v3070_v26 }
 0x2dc   : > { %3085 = vpow2.f32 %v1742_v29  ;;  %v1672_v2 = vsub.f32 %v3781_v8, %v1583_v61  ;;  %v1673_v3 = vsub.f32 %v3783_v9, %v1583_v61 }
 0x2dd   : > { %v3074_v35 = vpop.eup %3073  ;;  %3087 = vpow2.f32 %v1744_v32  ;;  %1855 = vadd.xlane.f32.xlu1 %v1854_v44 }
 0x2de   : > { %v3076_v53 = vpop.eup %3075  ;;  %v1746_v7 = vmul.f32 1.442695, %v1672_v2  ;;  %v1748_v5 = vmul.f32 1.442695, %v1673_v3  ;;  %v1950_v58 = vpack.c.bf16 %v3074_v35, %v3070_v26 }
 0x2df   : > { %v1586_v6 = vpop.xlane.xlu1 %1585  ;;  %v1951_v0 = vpack.c.bf16 %v3076_v53, %v3072_v63  ;;  %v1857_v56 = vadd.f32 %v3076_v53, %v3074_v35 }
 0x2e0   : > { %3089 = vpow2.f32 %v1746_v7  ;;  %v1674_v16 = vsub.f32 %v3787_v11, %v1586_v6  ;;  %v1675_v59 = vsub.f32 %v3789_v12, %v1586_v6 }
 0x2e1   : > { %v3078_v60 = vpop.eup %3077  ;;  %3091 = vpow2.f32 %v1748_v5  ;;  %2142 = vmatprep.mubr.bf16.mxu0 %v1951_v0  ;;  %1858 = vadd.xlane.f32.xlu1 %v1857_v56 }
 0x2e2   : > { %v3080_v8 = vpop.eup %3079  ;;  %v1750_v9 = vmul.f32 1.442695, %v1674_v16  ;;  %v1752_v38 = vmul.f32 1.442695, %v1675_v59  ;;  %2143 = vmatmul.mubr.bf16.vlgmr.msra.gmra.mxu0 %v1950_v58 }
 0x2e3   : > { %v1589_v41 = vpop.xlane.xlu1 %1588  ;;  %v1860_v50 = vadd.f32 %v3080_v8, %v3078_v60 }
 0x2e4   : > { %3093 = vpow2.f32 %v1750_v9  ;;  %v1676_v62 = vsub.f32 %v3793_v14, %v1589_v41  ;;  %v1677_v26 = vsub.f32 %v3795_v15, %v1589_v41 }
 0x2e5   : > { %v3082_v63 = vpop.eup %3081  ;;  %3095 = vpow2.f32 %v1752_v38  ;;  %1861 = vadd.xlane.f32.xlu1 %v1860_v50 }
 0x2e6   : > { %v3084_v11 = vpop.eup %3083  ;;  %v1754_v12 = vmul.f32 1.442695, %v1676_v62  ;;  %v1756_v29 = vmul.f32 1.442695, %v1677_v26  ;;  %v1952_v32 = vpack.c.bf16 %v3082_v63, %v3078_v60 }
 0x2e7   : > { %v1592_v61 = vpop.xlane.xlu1 %1591  ;;  %v1953_v44 = vpack.c.bf16 %v3084_v11, %v3080_v8  ;;  %v1863_v2 = vadd.f32 %v3084_v11, %v3082_v63 }
 0x2e8   : > { %3097 = vpow2.f32 %v1754_v12  ;;  %v1678_v3 = vsub.f32 %v3799_v17, %v1592_v61  ;;  %v1679_v35 = vsub.f32 %v3801_v18, %v1592_v61 }
 0x2e9   : > { %v3086_v53 = vpop.eup %3085  ;;  %3099 = vpow2.f32 %v1756_v29  ;;  %2150 = vmatprep.mubr.bf16.mxu0 %v1953_v44  ;;  %1864 = vadd.xlane.f32.xlu1 %v1863_v2 }
 0x2ea   : > { %v3088_v14 = vpop.eup %3087  ;;  %v1758_v15 = vmul.f32 1.442695, %v1678_v3  ;;  %v1760_v7 = vmul.f32 1.442695, %v1679_v35  ;;  %2151 = vmatmul.mubr.bf16.gmra.mxu0 %v1952_v32 }
 0x2eb   : > { %v1595_v5 = vpop.xlane.xlu1 %1594  ;;  %v1866_v58 = vadd.f32 %v3088_v14, %v3086_v53 }
 0x2ec   : > { %3101 = vpow2.f32 %v1758_v15  ;;  %v1680_v6 = vsub.f32 %v3805_v20, %v1595_v5  ;;  %v1681_v0 = vsub.f32 %v3807_v21, %v1595_v5 }
 0x2ed   : > { %v3090_v56 = vpop.eup %3089  ;;  %3103 = vpow2.f32 %v1760_v7  ;;  %1867 = vadd.xlane.f32.xlu1 %v1866_v58 }
 0x2ee   : > { %v3092_v17 = vpop.eup %3091  ;;  %v1762_v18 = vmul.f32 1.442695, %v1680_v6  ;;  %v1764_v16 = vmul.f32 1.442695, %v1681_v0  ;;  %v1954_v59 = vpack.c.bf16 %v3090_v56, %v3086_v53 }
 0x2ef   : > { %v1598_v60 = vpop.xlane.xlu1 %1597  ;;  %v1955_v8 = vpack.c.bf16 %v3092_v17, %v3088_v14  ;;  %v1869_v9 = vadd.f32 %v3092_v17, %v3090_v56 }
 0x2f0   : > { %3105 = vpow2.f32 %v1762_v18  ;;  %v1682_v38 = vsub.f32 %v3811_v24, %v1598_v60  ;;  %v1683_v41 = vsub.f32 %v3813_v25, %v1598_v60 }
 0x2f1   : > { %v3094_v50 = vpop.eup %3093  ;;  %3107 = vpow2.f32 %v1764_v16  ;;  %2158 = vmatprep.mubr.bf16.mxu0 %v1955_v8  ;;  %1870 = vadd.xlane.f32.xlu1 %v1869_v9 }
 0x2f2   : > { %v3096_v20 = vpop.eup %3095  ;;  %v1766_v21 = vmul.f32 1.442695, %v1682_v38  ;;  %v1768_v62 = vmul.f32 1.442695, %v1683_v41  ;;  %2159 = vmatmul.mubr.bf16.gmra.mxu0 %v1954_v59 }
 0x2f3   : > { %v1601_v26 = vpop.xlane.xlu1 %1600  ;;  %v1872_v63 = vadd.f32 %v3096_v20, %v3094_v50 }
 0x2f4   : > { %3109 = vpow2.f32 %v1766_v21  ;;  %v1684_v11 = vsub.f32 %v3817_v27, %v1601_v26  ;;  %v1685_v12 = vsub.f32 %v3819_v28, %v1601_v26 }
 0x2f5   : > { %v3098_v29 = vpop.eup %3097  ;;  %3111 = vpow2.f32 %v1768_v62  ;;  %1873 = vadd.xlane.f32.xlu1 %v1872_v63 }
 0x2f6   : > { %v3100_v24 = vpop.eup %3099  ;;  %v1770_v25 = vmul.f32 1.442695, %v1684_v11  ;;  %v1772_v32 = vmul.f32 1.442695, %v1685_v12  ;;  %v1956_v61 = vpack.c.bf16 %v3098_v29, %v3094_v50 }
 0x2f7   : > { %v1604_v44 = vpop.xlane.xlu1 %1603  ;;  %v1957_v2 = vpack.c.bf16 %v3100_v24, %v3096_v20  ;;  %v1875_v3 = vadd.f32 %v3100_v24, %v3098_v29 }
 0x2f8   : > { %3113 = vpow2.f32 %v1770_v25  ;;  %v1686_v35 = vsub.f32 %v3823_v30, %v1604_v44  ;;  %v1687_v53 = vsub.f32 %v3825_v31, %v1604_v44 }
 0x2f9   : > { %v3102_v14 = vpop.eup %3101  ;;  %3115 = vpow2.f32 %v1772_v32  ;;  %2166 = vmatprep.mubr.bf16.mxu0 %v1957_v2  ;;  %1876 = vadd.xlane.f32.xlu1 %v1875_v3 }
 0x2fa   : > { %v3104_v27 = vpop.eup %3103  ;;  %v1774_v28 = vmul.f32 1.442695, %v1686_v35  ;;  %v1776_v15 = vmul.f32 1.442695, %v1687_v53  ;;  %2167 = vmatmul.mubr.bf16.gmra.mxu0 %v1956_v61 }
 0x2fb   : > { %v1607_v7 = vpop.xlane.xlu1 %1606  ;;  %v1878_v5 = vadd.f32 %v3104_v27, %v3102_v14 }
 0x2fc   : > { %3117 = vpow2.f32 %v1774_v28  ;;  %v1688_v58 = vsub.f32 %v3829_v33, %v1607_v7  ;;  %v1689_v6 = vsub.f32 %v3831_v34, %v1607_v7 }
 0x2fd   : > { %v3106_v0 = vpop.eup %3105  ;;  %3119 = vpow2.f32 %v1776_v15  ;;  %1879 = vadd.xlane.f32.xlu1 %v1878_v5 }
 0x2fe   : > { %v3108_v30 = vpop.eup %3107  ;;  %v1778_v31 = vmul.f32 1.442695, %v1688_v58  ;;  %v1780_v56 = vmul.f32 1.442695, %v1689_v6  ;;  %v1958_v17 = vpack.c.bf16 %v3106_v0, %v3102_v14 }
 0x2ff   : > { %v1610_v18 = vpop.xlane.xlu1 %1609  ;;  %v1959_v16 = vpack.c.bf16 %v3108_v30, %v3104_v27  ;;  %v1881_v59 = vadd.f32 %v3108_v30, %v3106_v0 }
 0x300   : > { %3121 = vpow2.f32 %v1778_v31  ;;  %v1690_v60 = vsub.f32 %v3835_v36, %v1610_v18  ;;  %v1691_v8 = vsub.f32 %v3837_v37, %v1610_v18 }
 0x301   : > { %v3110_v9 = vpop.eup %3109  ;;  %3123 = vpow2.f32 %v1780_v56  ;;  %2174 = vmatprep.mubr.bf16.mxu0 %v1959_v16  ;;  %1882 = vadd.xlane.f32.xlu1 %v1881_v59 }
 0x302   : > { %v3112_v33 = vpop.eup %3111  ;;  %v1782_v34 = vmul.f32 1.442695, %v1690_v60  ;;  %v1784_v38 = vmul.f32 1.442695, %v1691_v8  ;;  %2175 = vmatmul.mubr.bf16.gmra.mxu0 %v1958_v17 }
 0x303   : > { %v1613_v41 = vpop.xlane.xlu1 %1612  ;;  %v1884_v50 = vadd.f32 %v3112_v33, %v3110_v9 }
 0x304   : > { %3125 = vpow2.f32 %v1782_v34  ;;  %v1692_v20 = vsub.f32 %v3841_v39, %v1613_v41  ;;  %v1693_v21 = vsub.f32 %v3843_v40, %v1613_v41 }
 0x305   : > { %v3114_v62 = vpop.eup %3113  ;;  %3127 = vpow2.f32 %v1784_v38  ;;  %1885 = vadd.xlane.f32.xlu1 %v1884_v50 }
 0x306   : > { %v3116_v36 = vpop.eup %3115  ;;  %v1786_v37 = vmul.f32 1.442695, %v1692_v20  ;;  %v1788_v26 = vmul.f32 1.442695, %v1693_v21  ;;  %v1960_v63 = vpack.c.bf16 %v3114_v62, %v3110_v9 }
 0x307   : > { %v1616_v11 = vpop.xlane.xlu1 %1615  ;;  %v1961_v12 = vpack.c.bf16 %v3116_v36, %v3112_v33  ;;  %v1887_v29 = vadd.f32 %v3116_v36, %v3114_v62 }
 0x308   : > { %3129 = vpow2.f32 %v1786_v37  ;;  %v1694_v24 = vsub.f32 %v3847_v42, %v1616_v11  ;;  %v1695_v25 = vsub.f32 %v3849_v43, %v1616_v11 }
 0x309   : > { %v3118_v32 = vpop.eup %3117  ;;  %3131 = vpow2.f32 %v1788_v26  ;;  %2182 = vmatprep.mubr.bf16.mxu0 %v1961_v12  ;;  %1888 = vadd.xlane.f32.xlu1 %v1887_v29 }
 0x30a   : > { %v3120_v39 = vpop.eup %3119  ;;  %v1790_v40 = vmul.f32 1.442695, %v1694_v24  ;;  %v1792_v61 = vmul.f32 1.442695, %v1695_v25  ;;  %2183 = vmatmul.mubr.bf16.gmra.mxu0 %v1960_v63 }
 0x30b   : > { %v1619_v44 = vpop.xlane.xlu1 %1618  ;;  %v1890_v2 = vadd.f32 %v3120_v39, %v3118_v32 }
 0x30c   : > { %3133 = vpow2.f32 %v1790_v40  ;;  %v1696_v3 = vsub.f32 %v3853_v45, %v1619_v44  ;;  %v1697_v35 = vsub.f32 %v3855_v46, %v1619_v44 }
 0x30d   : > { %v3122_v53 = vpop.eup %3121  ;;  %3135 = vpow2.f32 %v1792_v61  ;;  %1891 = vadd.xlane.f32.xlu1 %v1890_v2 }
 0x30e   : > { %v3124_v42 = vpop.eup %3123  ;;  %v1794_v43 = vmul.f32 1.442695, %v1696_v3  ;;  %v1796_v14 = vmul.f32 1.442695, %v1697_v35  ;;  %v1962_v27 = vpack.c.bf16 %v3122_v53, %v3118_v32 }
 0x30f   : > { %v1622_v28 = vpop.xlane.xlu1 %1621  ;;  %v1963_v15 = vpack.c.bf16 %v3124_v42, %v3120_v39  ;;  %v1893_v7 = vadd.f32 %v3124_v42, %v3122_v53 }
 0x310   : > { %3137 = vpow2.f32 %v1794_v43  ;;  %v1698_v5 = vsub.f32 %v3859_v48, %v1622_v28  ;;  %v1699_v58 = vsub.f32 %v3861_v49, %v1622_v28 }
 0x311   : > { %v3126_v6 = vpop.eup %3125  ;;  %3139 = vpow2.f32 %v1796_v14  ;;  %2190 = vmatprep.mubr.bf16.mxu0 %v1963_v15  ;;  %1894 = vadd.xlane.f32.xlu1 %v1893_v7 }
 0x312   : > { %v3128_v45 = vpop.eup %3127  ;;  %v1798_v46 = vmul.f32 1.442695, %v1698_v5  ;;  %v1800_v0 = vmul.f32 1.442695, %v1699_v58  ;;  %2191 = vmatmul.mubr.bf16.gmra.mxu0 %v1962_v27  ;;  %v4127_v58 = vld [vmem:[#allocation12_spill] sm:$0xff] }
 0x313   : > { %v1625_v30 = vpop.xlane.xlu1 %1624  ;;  %v1896_v31 = vadd.f32 %v3128_v45, %v3126_v6 }
 0x314   : > { %3141 = vpow2.f32 %v1798_v46  ;;  %v1700_v56 = vsub.f32 %v3865_v51, %v1625_v30  ;;  %v1701_v17 = vsub.f32 %v3867_v52, %v1625_v30 }
 0x315   : > { %v3130_v18 = vpop.eup %3129  ;;  %3143 = vpow2.f32 %v1800_v0  ;;  %1897 = vadd.xlane.f32.xlu1 %v1896_v31 }
 0x316   : > { %v3132_v48 = vpop.eup %3131  ;;  %v1802_v49 = vmul.f32 1.442695, %v1700_v56  ;;  %v1804_v16 = vmul.f32 1.442695, %v1701_v17  ;;  %v1964_v59 = vpack.c.bf16 %v3130_v18, %v3126_v6 }
 0x317   : > { %v1628_v60 = vpop.xlane.xlu1 %1627  ;;  %v1965_v8 = vpack.c.bf16 %v3132_v48, %v3128_v45  ;;  %v1899_v9 = vadd.f32 %v3132_v48, %v3130_v18  ;;  %v4128_v45 = vld [vmem:[#allocation13_spill] sm:$0xff]  ;;  %v4129_v48 = vld [vmem:[#allocation14_spill] sm:$0xff] }
 0x318   : > { %3145 = vpow2.f32 %v1802_v49  ;;  %v1702_v33 = vsub.f32 %v3871_v54, %v1628_v60  ;;  %v1703_v34 = vsub.f32 %v3873_v55, %v1628_v60 }
 0x319   : > { %v3134_v38 = vpop.eup %3133  ;;  %3147 = vpow2.f32 %v1804_v16  ;;  %2198 = vmatprep.mubr.bf16.mxu0 %v1965_v8  ;;  %1900 = vadd.xlane.f32.xlu1 %v1899_v9  ;;  %v4130_v16 = vld [vmem:[#allocation15_spill] sm:$0xff] }
 0x31a   : > { %v3136_v51 = vpop.eup %3135  ;;  %v1806_v52 = vmul.f32 1.442695, %v1702_v33  ;;  %v1808_v41 = vmul.f32 1.442695, %v1703_v34  ;;  %2199 = vmatmul.mubr.bf16.gmra.mxu0 %v1964_v59 }
 0x31b   : > { %v1631_v50 = vpop.xlane.xlu1 %1630  ;;  %v1902_v20 = vadd.f32 %v3136_v51, %v3134_v38 }
 0x31c   : > { %3149 = vpow2.f32 %v1806_v52  ;;  %v1704_v21 = vsub.f32 %v3877_v57, %v1631_v50  ;;  %v1705_v62 = vsub.f32 %v3879_v22, %v1631_v50 }
 0x31d   : > { %v3138_v36 = vpop.eup %3137  ;;  %3151 = vpow2.f32 %v1808_v41  ;;  %1903 = vadd.xlane.f32.xlu0 %v1902_v20  ;;  %v4132_v41 = vld [vmem:[#allocation17_spill] sm:$0xff] }
 0x31e   : > { %v3140_v54 = vpop.eup %3139  ;;  %v1810_v55 = vmul.f32 1.442695, %v1704_v21  ;;  %v1812_v37 = vmul.f32 1.442695, %v1705_v62  ;;  %v1966_v26 = vpack.c.bf16 %v3138_v36, %v3134_v38 }
 0x31f   : > { %v1634_v63 = vpop.xlane.xlu1 %1633  ;;  %v1967_v11 = vpack.c.bf16 %v3140_v54, %v3136_v51  ;;  %v1905_v12 = vadd.f32 %v3140_v54, %v3138_v36  ;;  %v4131_v51 = vld [vmem:[#allocation16_spill] sm:$0xff] }
 0x320   : > { %3153 = vpow2.f32 %v1810_v55  ;;  %v1706_v29 = vsub.f32 %v3883_v1, %v1634_v63  ;;  %v1707_v24 = vsub.f32 %v3885_v4, %v1634_v63  ;;  %v4133_v63 = vld [vmem:[#allocation18_spill] sm:$0xff] }
 0x321   : > { %v3142_v25 = vpop.eup %3141  ;;  %3155 = vpow2.f32 %v1812_v37  ;;  %2206 = vmatprep.mubr.bf16.mxu0 %v1967_v11  ;;  %1906 = vadd.xlane.f32.xlu0 %v1905_v12  ;;  %v4134_v12 = vld [vmem:[#allocation19_spill] sm:$0xff] }
 0x322   : > { %v3144_v57 = vpop.eup %3143  ;;  %v1814_v22 = vmul.f32 1.442695, %v1706_v29  ;;  %v1816_v32 = vmul.f32 1.442695, %v1707_v24  ;;  %2207 = vmatmul.mubr.bf16.gmra.mxu0 %v1966_v26 }
 0x323   : > { %v1637_v39 = vpop.xlane.xlu1 %1636  ;;  %v1908_v40 = vadd.f32 %v3144_v57, %v3142_v25 }
 0x324   : > { %3157 = vpow2.f32 %v1814_v22  ;;  %v1708_v61 = vsub.f32 %v3889_v10, %v1637_v39  ;;  %v1709_v44 = vsub.f32 %v3891_v13, %v1637_v39 }
 0x325   : > { %v3146_v2 = vpop.eup %3145  ;;  %3159 = vpow2.f32 %v1816_v32  ;;  %1909 = vadd.xlane.f32.xlu0 %v1908_v40  ;;  %v4135_v40 = vld [vmem:[#allocation20_spill] sm:$0xff] }
 0x326   : > { %v3148_v1 = vpop.eup %3147  ;;  %v1818_v4 = vmul.f32 1.442695, %v1708_v61  ;;  %v1820_v3 = vmul.f32 1.442695, %v1709_v44  ;;  %v1968_v35 = vpack.c.bf16 %v3146_v2, %v3142_v25  ;;  %v4136_v44 = vld [vmem:[#allocation21_spill] sm:$0xff] }
 0x327   : > { %v1640_v53 = vpop.xlane.xlu1 %1639  ;;  %v1969_v42 = vpack.c.bf16 %v3148_v1, %v3144_v57  ;;  %v1911_v43 = vadd.f32 %v3148_v1, %v3146_v2 }
 0x328   : > { %3161 = vpow2.f32 %v1818_v4  ;;  %v1710_v14 = vsub.f32 %v3895_v19, %v1640_v53  ;;  %v1711_v27 = vsub.f32 %v3897_v23, %v1640_v53 }
 0x329   : > { %v3150_v28 = vpop.eup %3149  ;;  %3163 = vpow2.f32 %v1820_v3  ;;  %2214 = vmatprep.mubr.bf16.mxu0 %v1969_v42  ;;  %1912 = vadd.xlane.f32.xlu0 %v1911_v43 }
 0x32a   : > { %v3152_v10 = vpop.eup %3151  ;;  %v1822_v13 = vmul.f32 1.442695, %v1710_v14  ;;  %v1824_v15 = vmul.f32 1.442695, %v1711_v27  ;;  %2215 = vmatmul.mubr.bf16.gmra.mxu0 %v1968_v35  ;;  %v4137_v27 = vld [vmem:[#allocation22_spill] sm:$0xff] }
 0x32b   : > { %v1643_v7 = vpop.xlane.xlu1 %1642  ;;  %v1914_v5 = vadd.f32 %v3152_v10, %v3150_v28 }
 0x32c   : > { %3165 = vpow2.f32 %v1822_v13  ;;  %v1712_v6 = vsub.f32 %v4127_v58, %v1643_v7  ;;  %v1713_v46 = vsub.f32 %v4128_v45, %v1643_v7 }
 0x32d   : > { %v3154_v0 = vpop.eup %3153  ;;  %3167 = vpow2.f32 %v1824_v15  ;;  %1915 = vadd.xlane.f32.xlu0 %v1914_v5 }
 0x32e   : > { %v3156_v19 = vpop.eup %3155  ;;  %v1826_v23 = vmul.f32 1.442695, %v1712_v6  ;;  %v1828_v30 = vmul.f32 1.442695, %v1713_v46  ;;  %v1970_v31 = vpack.c.bf16 %v3154_v0, %v3150_v28 }
 0x32f   : > { %v1646_v56 = vpop.xlane.xlu1 %1645  ;;  %v1971_v17 = vpack.c.bf16 %v3156_v19, %v3152_v10  ;;  %v1917_v18 = vadd.f32 %v3156_v19, %v3154_v0  ;;  %v4138_v10 = vld [vmem:[#allocation23_spill] sm:$0xff]  ;;  %v4139_v0 = vld [vmem:[#allocation24_spill] sm:$0xff] }
 0x330   : > { %3169 = vpow2.f32 %v1826_v23  ;;  %v1714_v49 = vsub.f32 %v4129_v48, %v1646_v56  ;;  %v1715_v59 = vsub.f32 %v4130_v16, %v1646_v56 }
 0x331   : > { %v3158_v60 = vpop.eup %3157  ;;  %3171 = vpow2.f32 %v1828_v30  ;;  %2222 = vmatprep.mubr.bf16.mxu0 %v1971_v17  ;;  %1918 = vadd.xlane.f32.xlu0 %v1917_v18 }
 0x332   : > { %v3160_v8 = vpop.eup %3159  ;;  %v1830_v9 = vmul.f32 1.442695, %v1714_v49  ;;  %v1832_v33 = vmul.f32 1.442695, %v1715_v59  ;;  %2223 = vmatmul.mubr.bf16.gmra.mxu0 %v1970_v31 }
 0x333   : > { %v1649_v34 = vpop.xlane.xlu0 %1648  ;;  %v1920_v38 = vadd.f32 %v3160_v8, %v3158_v60 }
 0x334   : > { %3173 = vpow2.f32 %v1830_v9  ;;  %v1716_v52 = vsub.f32 %v4131_v51, %v1649_v34  ;;  %v1717_v50 = vsub.f32 %v4132_v41, %v1649_v34 }
 0x335   : > { %v3162_v20 = vpop.eup %3161  ;;  %3175 = vpow2.f32 %v1832_v33  ;;  %1921 = vadd.xlane.f32.xlu0 %v1920_v38 }
 0x336   : > { %v3164_v21 = vpop.eup %3163  ;;  %v1834_v62 = vmul.f32 1.442695, %v1716_v52  ;;  %v1836_v36 = vmul.f32 1.442695, %v1717_v50  ;;  %v1972_v54 = vpack.c.bf16 %v3162_v20, %v3158_v60 }
 0x337   : > { %v1652_v55 = vpop.xlane.xlu1 %1651  ;;  %v1973_v37 = vpack.c.bf16 %v3164_v21, %v3160_v8  ;;  %v1923_v26 = vadd.f32 %v3164_v21, %v3162_v20 }
 0x338   : > { %3177 = vpow2.f32 %v1834_v62  ;;  %v1718_v11 = vsub.f32 %v4133_v63, %v1652_v55  ;;  %v1719_v29 = vsub.f32 %v4134_v12, %v1652_v55 }
 0x339   : > { %v3166_v24 = vpop.eup %3165  ;;  %3179 = vpow2.f32 %v1836_v36  ;;  %2230 = vmatprep.mubr.bf16.mxu0 %v1973_v37  ;;  %1924 = vadd.xlane.f32.xlu0 %v1923_v26 }
 0x33a   : > { %v3168_v25 = vpop.eup %3167  ;;  %v1838_v57 = vmul.f32 1.442695, %v1718_v11  ;;  %v1840_v22 = vmul.f32 1.442695, %v1719_v29  ;;  %2231 = vmatmul.mubr.bf16.gmra.mxu0 %v1972_v54 }
 0x33b   : > { %v1655_v32 = vpop.xlane.xlu0 %1654  ;;  %v1926_v39 = vadd.f32 %v3168_v25, %v3166_v24 }
 0x33c   : > { %3181 = vpow2.f32 %v1838_v57  ;;  %v1720_v61 = vsub.f32 %v4135_v40, %v1655_v32  ;;  %v1721_v2 = vsub.f32 %v4136_v44, %v1655_v32 }
 0x33d   : > { %v3170_v1 = vpop.eup %3169  ;;  %3183 = vpow2.f32 %v1840_v22  ;;  %1927 = vadd.xlane.f32.xlu0 %v1926_v39 }
 0x33e   : > { %v3172_v4 = vpop.eup %3171  ;;  %v1842_v3 = vmul.f32 1.442695, %v1720_v61  ;;  %v1844_v35 = vmul.f32 1.442695, %v1721_v2  ;;  %v1974_v53 = vpack.c.bf16 %v3170_v1, %v3166_v24 }
 0x33f   : > { %v1658_v42 = vpop.xlane.xlu1 %1657  ;;  %v1975_v43 = vpack.c.bf16 %v3172_v4, %v3168_v25  ;;  %v1929_v14 = vadd.f32 %v3172_v4, %v3170_v1 }
 0x340   : > { %3185 = vpow2.f32 %v1842_v3  ;;  %v1722_v28 = vsub.f32 %v4137_v27, %v1658_v42  ;;  %v1723_v13 = vsub.f32 %v4138_v10, %v1658_v42 }
 0x341   : > { %v3174_v15 = vpop.eup %3173  ;;  %3187 = vpow2.f32 %v1844_v35  ;;  %2238 = vmatprep.mubr.bf16.mxu0 %v1975_v43  ;;  %1930 = vadd.xlane.f32.xlu0 %v1929_v14 }
 0x342   : > { %v3176_v7 = vpop.eup %3175  ;;  %v1846_v5 = vmul.f32 1.442695, %v1722_v28  ;;  %v1848_v58 = vmul.f32 1.442695, %v1723_v13  ;;  %2239 = vmatmul.mubr.bf16.gmra.mxu0 %v1974_v53 }
 0x343   : > { %v1661_v6 = vpop.xlane.xlu0 %1660  ;;  %v1932_v45 = vadd.f32 %v3176_v7, %v3174_v15 }
 0x344   : > { %3189 = vpow2.f32 %v1846_v5  ;;  %v1724_v46 = vsub.f32 %v3937_v47, %v1661_v6  ;;  %v1725_v19 = vsub.f32 %v4139_v0, %v1661_v6 }
 0x345   : > { %v3178_v23 = vpop.eup %3177  ;;  %3191 = vpow2.f32 %v1848_v58  ;;  %1933 = vadd.xlane.f32.xlu0 %v1932_v45 }
 0x346   : > { %v3180_v30 = vpop.eup %3179  ;;  %v1850_v31 = vmul.f32 1.442695, %v1724_v46  ;;  %v1852_v56 = vmul.f32 1.442695, %v1725_v19  ;;  %v1976_v17 = vpack.c.bf16 %v3178_v23, %v3174_v15 }
 0x347   : > { %v1977_v18 = vpack.c.bf16 %v3180_v30, %v3176_v7  ;;  %v1935_v48 = vadd.f32 %v3180_v30, %v3178_v23 }
 0x348   : > { %3193 = vpow2.f32 %v1850_v31 }
 0x349   : > { %v3182_v49 = vpop.eup %3181  ;;  %3195 = vpow2.f32 %v1852_v56  ;;  %2246 = vmatprep.mubr.bf16.mxu0 %v1977_v18  ;;  %1936 = vadd.xlane.f32.xlu0 %v1935_v48 }
 0x34a   : > { %v3184_v16 = vpop.eup %3183  ;;  %2247 = vmatmul.mubr.bf16.gmra.mxu0 %v1976_v17 }
 0x34b   : > { %v1938_v59 = vadd.f32 %v3184_v16, %v3182_v49 }
 0x34d   : > { %v3186_v47 = vpop.eup %3185  ;;  %1939 = vadd.xlane.f32.xlu0 %v1938_v59 }
 0x34e   : > { %v3188_v60 = vpop.eup %3187  ;;  %v1978_v8 = vpack.c.bf16 %v3186_v47, %v3182_v49 }
 0x34f   : > { %v1979_v9 = vpack.c.bf16 %v3188_v60, %v3184_v16  ;;  %v1941_v33 = vadd.f32 %v3188_v60, %v3186_v47 }
 0x351   : > { %v3190_v34 = vpop.eup %3189  ;;  %2254 = vmatprep.mubr.bf16.mxu0 %v1979_v9  ;;  %1942 = vadd.xlane.f32.xlu0 %v1941_v33 }
 0x352   : > { %v3192_v38 = vpop.eup %3191  ;;  %2255 = vmatmul.mubr.bf16.gmra.mxu0 %v1978_v8 }
 0x353   : > { %v1944_v51 = vadd.f32 %v3192_v38, %v3190_v34 }
 0x355   : > { %v3194_v52 = vpop.eup %3193  ;;  %1945 = vadd.xlane.f32.xlu0 %v1944_v51 }
 0x356   : > { %v3196_v41 = vpop.eup %3195  ;;  %v1980_v50 = vpack.c.bf16 %v3194_v52, %v3190_v34 }
 0x357   : > { %v1981_v20 = vpack.c.bf16 %v3196_v41, %v3192_v38  ;;  %v1947_v21 = vadd.f32 %v3196_v41, %v3194_v52 }
 0x359   : > { %2262 = vmatprep.mubr.bf16.mxu0 %v1981_v20  ;;  %1948 = vadd.xlane.f32.xlu0 %v1947_v21 }
 0x35a   : > { %2263 = vmatmul.mubr.bf16.gmra.mxu0 %v1980_v50 }
 0x366   : > { %v1856_v62 = vpop.xlane.xlu1 %1855 }
 0x367   : > { %3197 = vrcp.f32 %v1856_v62 }
 0x36a   : > { %v1859_v36 = vpop.xlane.xlu1 %1858 }
 0x36b   : > { %3199 = vrcp.f32 %v1859_v36 }
 0x36e   : > { %v1862_v54 = vpop.xlane.xlu1 %1861 }
 0x36f   : > { %3201 = vrcp.f32 %v1862_v54 }
 0x372   : > { %v1865_v55 = vpop.xlane.xlu1 %1864 }
 0x373   : > { %3203 = vrcp.f32 %v1865_v55 }
 0x374   : > { %v3198_v25 = vpop.eup %3197 }
 0x376   : > { %v1868_v37 = vpop.xlane.xlu1 %1867 }
 0x377   : > { %3205 = vrcp.f32 %v1868_v37 }
 0x378   : > { %v3200_v61 = vpop.eup %3199 }
 0x37a   : > { %v1871_v26 = vpop.xlane.xlu1 %1870 }
 0x37b   : > { %3207 = vrcp.f32 %v1871_v26 }
 0x37c   : > { %v3202_v3 = vpop.eup %3201 }
 0x37e   : > { %v1874_v63 = vpop.xlane.xlu1 %1873 }
 0x37f   : > { %3209 = vrcp.f32 %v1874_v63 }
 0x380   : > { %v3204_v27 = vpop.eup %3203 }
 0x382   : > { %v1877_v11 = vpop.xlane.xlu1 %1876 }
 0x383   : > { %3211 = vrcp.f32 %v1877_v11 }
 0x384   : > { %v3206_v5 = vpop.eup %3205 }
 0x386   : > { %v1880_v32 = vpop.xlane.xlu1 %1879 }
 0x387   : > { %3213 = vrcp.f32 %v1880_v32 }
 0x388   : > { %v3208_v19 = vpop.eup %3207 }
 0x38a   : > { %v1883_v35 = vpop.xlane.xlu1 %1882 }
 0x38b   : > { %3215 = vrcp.f32 %v1883_v35 }
 0x38c   : > { %v3210_v18 = vpop.eup %3209 }
 0x38e   : > { %v1886_v13 = vpop.xlane.xlu1 %1885 }
 0x38f   : > { %3217 = vrcp.f32 %v1886_v13 }
 0x390   : > { %v3212_v8 = vpop.eup %3211 }
 0x392   : > { %v1889_v23 = vpop.xlane.xlu1 %1888 }
 0x393   : > { %3219 = vrcp.f32 %v1889_v23 }
 0x394   : > { %v3214_v52 = vpop.eup %3213 }
 0x396   : > { %v1892_v59 = vpop.xlane.xlu1 %1891 }
 0x397   : > { %3221 = vrcp.f32 %v1892_v59 }
 0x398   : > { %v3216_v36 = vpop.eup %3215 }
 0x39a   : > { %v1895_v41 = vpop.xlane.xlu1 %1894 }
 0x39b   : > { %3223 = vrcp.f32 %v1895_v41 }
 0x39e   : > { %v1898_v26 = vpop.xlane.xlu1 %1897 }
 0x39f   : > { %3225 = vrcp.f32 %v1898_v26 }
 0x3a2   : > { %v2747_v12 = vpop.f32.mrf.mxu0 }
 0x3a4   : > { %v2748_v29 = vpop.f32.mrf.mxu0 }
 0x3a5   : > { %v2749_v24 = vadd.f32 %v2748_v29, %v2747_v12  ;;  %v3218_v12 = vpop.eup %3217 }
 0x3a6   : > { %v2750_v57 = vpop.f32.mrf.mxu0  ;;  %v4007_v45 = vpop.xlane.xlu0 %1903 }
 0x3a7   : > { %v2303_v22 = vmul.f32 %v3198_v25, %v2749_v24  ;;  %v3220_v32 = vpop.eup %3219 }
 0x3a8   : > { %v2751_v39 = vpop.f32.mrf.mxu0 }
 0x3a9   : > { %v2752_v40 = vadd.f32 %v2751_v39, %v2750_v57  ;;  %2336 = vxpose.xlu1.b32.start [1/16] (narrow) %v2303_v22, 32  ;;  %v1901_v39 = vpop.xlane.xlu1 %1900 }
 0x3aa   : > { %v2753_v44 = vpop.f32.mrf.mxu0  ;;  %v1907_v48 = vpop.xlane.xlu0 %1906  ;;  %3227 = vrcp.f32 %v1901_v39 }
 0x3ab   : > { %v2304_v2 = vmul.f32 %v3200_v61, %v2752_v40  ;;  %3229 = vrcp.f32 %v4007_v45 }
 0x3ac   : > { %v2754_v1 = vpop.f32.mrf.mxu0  ;;  %3231 = vrcp.f32 %v1907_v48 }
 0x3ad   : > { %v2755_v4 = vadd.f32 %v2754_v1, %v2753_v44  ;;  %2337 = vxpose.xlu1.b32.cont [2/16] (narrow) %v2304_v2, 32  ;;  %v3222_v1 = vpop.eup %3221 }
 0x3ae   : > { %v2756_v53 = vpop.f32.mrf.mxu0  ;;  %v1910_v34 = vpop.xlane.xlu0 %1909 }
 0x3af   : > { %v2305_v42 = vmul.f32 %v3202_v3, %v2755_v4  ;;  %3233 = vrcp.f32 %v1910_v34 }
 0x3b0   : > { %v2757_v43 = vpop.f32.mrf.mxu0 }
 0x3b1   : > { %v2758_v14 = vadd.f32 %v2757_v43, %v2756_v53  ;;  %2338 = vxpose.xlu1.b32.cont [3/16] (narrow) %v2305_v42, 32  ;;  %v3224_v43 = vpop.eup %3223 }
 0x3b2   : > { %v2759_v28 = vpop.f32.mrf.mxu0  ;;  %v1913_v54 = vpop.xlane.xlu0 %1912 }
 0x3b3   : > { %v2306_v10 = vmul.f32 %v3204_v27, %v2758_v14  ;;  %3235 = vrcp.f32 %v1913_v54 }
 0x3b4   : > { %v2760_v15 = vpop.f32.mrf.mxu0 }
 0x3b5   : > { %v2761_v7 = vadd.f32 %v2760_v15, %v2759_v28  ;;  %2339 = vxpose.xlu1.b32.cont [4/16] (narrow) %v2306_v10, 32  ;;  %v3226_v15 = vpop.eup %3225 }
 0x3b6   : > { %v2762_v58 = vpop.f32.mrf.mxu0  ;;  %v1916_v25 = vpop.xlane.xlu0 %1915 }
 0x3b7   : > { %v2307_v6 = vmul.f32 %v3206_v5, %v2761_v7  ;;  %3237 = vrcp.f32 %v1916_v25 }
 0x3b8   : > { %v2763_v46 = vpop.f32.mrf.mxu0 }
 0x3b9   : > { %v2764_v0 = vadd.f32 %v2763_v46, %v2762_v58  ;;  %2340 = vxpose.xlu1.b32.cont [5/16] (narrow) %v2307_v6, 32  ;;  %v3228_v46 = vpop.eup %3227 }
 0x3ba   : > { %v2765_v30 = vpop.f32.mrf.mxu0  ;;  %v1919_v4 = vpop.xlane.xlu0 %1918 }
 0x3bb   : > { %v2308_v31 = vmul.f32 %v3208_v19, %v2764_v0  ;;  %3239 = vrcp.f32 %v1919_v4 }
 0x3bc   : > { %v2766_v56 = vpop.f32.mrf.mxu0 }
 0x3bd   : > { %v2767_v17 = vadd.f32 %v2766_v56, %v2765_v30  ;;  %2341 = vxpose.xlu1.b32.cont [6/16] (narrow) %v2308_v31, 32  ;;  %v3230_v31 = vpop.eup %3229 }
 0x3be   : > { %v2768_v49 = vpop.f32.mrf.mxu0  ;;  %v1922_v28 = vpop.xlane.xlu0 %1921 }
 0x3bf   : > { %v2309_v16 = vmul.f32 %v3210_v18, %v2767_v17  ;;  %3241 = vrcp.f32 %v1922_v28 }
 0x3c0   : > { %v2769_v47 = vpop.f32.mrf.mxu0 }
 0x3c1   : > { %v2770_v60 = vadd.f32 %v2769_v47, %v2768_v49  ;;  %2342 = vxpose.xlu1.b32.cont [7/16] (narrow) %v2309_v16, 32  ;;  %v3232_v16 = vpop.eup %3231 }
 0x3c2   : > { %v2771_v9 = vpop.f32.mrf.mxu0  ;;  %v1925_v0 = vpop.xlane.xlu0 %1924 }
 0x3c3   : > { %v2310_v33 = vmul.f32 %v3212_v8, %v2770_v60  ;;  %3243 = vrcp.f32 %v1925_v0 }
 0x3c4   : > { %v2772_v38 = vpop.f32.mrf.mxu0 }
 0x3c5   : > { %v2773_v51 = vadd.f32 %v2772_v38, %v2771_v9  ;;  %2343 = vxpose.xlu1.b32.cont [8/16] (narrow) %v2310_v33, 32  ;;  %v3234_v9 = vpop.eup %3233 }
 0x3c6   : > { %v2774_v50 = vpop.f32.mrf.mxu0  ;;  %v1928_v18 = vpop.xlane.xlu0 %1927 }
 0x3c7   : > { %v2311_v20 = vmul.f32 %v3214_v52, %v2773_v51  ;;  %v3236_v41 = vpop.eup %3235  ;;  %3245 = vrcp.f32 %v1928_v18 }
 0x3c8   : > { %v2775_v21 = vpop.f32.mrf.mxu0  ;;  %v3238_v54 = vpop.eup %3237 }
 0x3c9   : > { %v2776_v62 = vadd.f32 %v2775_v21, %v2774_v50  ;;  %2344 = vxpose.xlu1.b32.cont [9/16] (narrow) %v2311_v20, 32 }
 0x3ca   : > { %v2777_v55 = vpop.f32.mrf.mxu0  ;;  %v1931_v33 = vpop.xlane.xlu0 %1930 }
 0x3cb   : > { %v2312_v37 = vmul.f32 %v3216_v36, %v2776_v62  ;;  %3247 = vrcp.f32 %v1931_v33 }
 0x3cc   : > { %v2778_v63 = vpop.f32.mrf.mxu0 }
 0x3cd   : > { %v2779_v11 = vadd.f32 %v2778_v63, %v2777_v55  ;;  %2345 = vxpose.xlu1.b32.cont [10/16] (narrow) %v2312_v37, 32 }
 0x3ce   : > { %v2780_v29 = vpop.f32.mrf.mxu0  ;;  %v1934_v21 = vpop.xlane.xlu0 %1933 }
 0x3cf   : > { %v2313_v24 = vmul.f32 %v3218_v12, %v2779_v11  ;;  %v3240_v11 = vpop.eup %3239  ;;  %3249 = vrcp.f32 %v1934_v21 }
 0x3d0   : > { %v2781_v57 = vpop.f32.mrf.mxu0 }
 0x3d1   : > { %v2782_v22 = vadd.f32 %v2781_v57, %v2780_v29  ;;  %2346 = vxpose.xlu1.b32.cont [11/16] (narrow) %v2313_v24, 32 }
 0x3d2   : > { %v2783_v40 = vpop.f32.mrf.mxu0  ;;  %v1937_v12 = vpop.xlane.xlu0 %1936 }
 0x3d3   : > { %v2314_v61 = vmul.f32 %v3220_v32, %v2782_v22  ;;  %v3242_v22 = vpop.eup %3241  ;;  %3251 = vrcp.f32 %v1937_v12 }
 0x3d4   : > { %v2784_v44 = vpop.f32.mrf.mxu0 }
 0x3d5   : > { %v2785_v2 = vadd.f32 %v2784_v44, %v2783_v40  ;;  %2347 = vxpose.xlu1.b32.cont [12/16] (narrow) %v2314_v61, 32 }
 0x3d6   : > { %v2786_v3 = vpop.f32.mrf.mxu0  ;;  %v1940_v40 = vpop.xlane.xlu0 %1939 }
 0x3d7   : > { %v2315_v35 = vmul.f32 %v3222_v1, %v2785_v2  ;;  %v3244_v2 = vpop.eup %3243  ;;  %3253 = vrcp.f32 %v1940_v40 }
 0x3d8   : > { %v2787_v53 = vpop.f32.mrf.mxu0 }
 0x3d9   : > { %v2788_v42 = vadd.f32 %v2787_v53, %v2786_v3  ;;  %2348 = vxpose.xlu1.b32.cont [13/16] (narrow) %v2315_v35, 32  ;;  %v3246_v53 = vpop.eup %3245 }
 0x3da   : > { %v2789_v14 = vpop.f32.mrf.mxu0 }
 0x3db   : > { %v2316_v27 = vmul.f32 %v3224_v43, %v2788_v42  ;;  %v1943_v42 = vpop.xlane.xlu0 %1942 }
 0x3dc   : > { %v2790_v10 = vpop.f32.mrf.mxu0  ;;  %3255 = vrcp.f32 %v1943_v42 }
 0x3dd   : > { %v2791_v13 = vadd.f32 %v2790_v10, %v2789_v14  ;;  %2349 = vxpose.xlu1.b32.cont [14/16] (narrow) %v2316_v27, 32  ;;  %v3248_v10 = vpop.eup %3247 }
 0x3de   : > { %v2792_v7 = vpop.f32.mrf.mxu0 }
 0x3df   : > { %v2317_v5 = vmul.f32 %v3226_v15, %v2791_v13 }
 0x3e0   : > { %v2793_v58 = vpop.f32.mrf.mxu0 }
 0x3e1   : > { %v2794_v6 = vadd.f32 %v2793_v58, %v2792_v7  ;;  %2350 = vxpose.xlu1.b32.cont [15/16] (narrow) %v2317_v5, 32  ;;  %v1946_v7 = vpop.xlane.xlu0 %1945 }
 0x3e2   : > { %v2795_v45 = vpop.f32.mrf.mxu0  ;;  %3257 = vrcp.f32 %v1946_v7 }
 0x3e3   : > { %v2318_v19 = vmul.f32 %v3228_v46, %v2794_v6  ;;  %v3250_v6 = vpop.eup %3249 }
 0x3e4   : > { %v2796_v23 = vpop.f32.mrf.mxu0 }
 0x3e5   : > { %v2797_v30 = vadd.f32 %v2796_v23, %v2795_v45  ;;  %2351 = vxpose.xlu1.b32.end [16/16] (narrow) %v2318_v19, 32  ;;  %v3252_v23 = vpop.eup %3251 }
 0x3e6   : > { %v2798_v56 = vpop.f32.mrf.mxu0 }
 0x3e7   : > { %v2319_v17 = vmul.f32 %v3230_v31, %v2797_v30  ;;  %v1949_v30 = vpop.xlane.xlu0 %1948 }
 0x3e8   : > { %v2799_v48 = vpop.f32.mrf.mxu0  ;;  %3259 = vrcp.f32 %v1949_v30 }
 0x3e9   : > { %v2800_v49 = vadd.f32 %v2799_v48, %v2798_v56  ;;  %2368 = vxpose.xlu0.b32.start [1/16] (narrow) %v2319_v17, 32  ;;  %v3254_v48 = vpop.eup %3253 }
 0x3ea   : > { %v2801_v59 = vpop.f32.mrf.mxu0 }
 0x3eb   : > { %v2320_v47 = vmul.f32 %v3232_v16, %v2800_v49 }
 0x3ec   : > { %v2802_v60 = vpop.f32.mrf.mxu0 }
 0x3ed   : > { %v2803_v8 = vadd.f32 %v2802_v60, %v2801_v59  ;;  %2369 = vxpose.xlu0.b32.cont [2/16] (narrow) %v2320_v47, 32  ;;  %v3256_v60 = vpop.eup %3255 }
 0x3ee   : > { %v2804_v34 = vpop.f32.mrf.mxu0 }
 0x3ef   : > { %v2321_v38 = vmul.f32 %v3234_v9, %v2803_v8 }
 0x3f0   : > { %v2805_v51 = vpop.f32.mrf.mxu0 }
 0x3f1   : > { %v2806_v52 = vadd.f32 %v2805_v51, %v2804_v34  ;;  %2370 = vxpose.xlu0.b32.cont [3/16] (narrow) %v2321_v38, 32  ;;  %v3258_v38 = vpop.eup %3257 }
 0x3f2   : > { %v2807_v50 = vpop.f32.mrf.mxu0 }
 0x3f3   : > { %v2322_v20 = vmul.f32 %v3236_v41, %v2806_v52 }
 0x3f4   : > { %v2808_v62 = vpop.f32.mrf.mxu0 }
 0x3f5   : > { %v2809_v36 = vadd.f32 %v2808_v62, %v2807_v50  ;;  %2371 = vxpose.xlu0.b32.cont [4/16] (narrow) %v2322_v20, 32  ;;  %v3260_v20 = vpop.eup %3259  ;;  %v2400_v62 = vstv %s2335_s7 }
 0x3f6   : > { %v2810_v55 = vpop.f32.mrf.mxu0 }
 0x3f7   : > { %v2323_v37 = vmul.f32 %v3238_v54, %v2809_v36 }
 0x3f8   : > { %v2811_v26 = vpop.f32.mrf.mxu0 }
 0x3f9   : > { %v2812_v63 = vadd.f32 %v2811_v26, %v2810_v55  ;;  %2372 = vxpose.xlu0.b32.cont [5/16] (narrow) %v2323_v37, 32  ;;  %v3261_v55 = vld [vmem:[%s3525_s28] sm:$0xff] }
 0x3fa   : > { %v2813_v29 = vpop.f32.mrf.mxu0 }
 0x3fb   : > { %v2324_v24 = vmul.f32 %v3240_v11, %v2812_v63  ;;  %v3262_v11 = vld [vmem:[%s3525_s28 + $0x10] sm:$0xff] }
 0x3fc   : > { %v2814_v25 = vpop.f32.mrf.mxu0 }
 0x3fd   : > { %v2815_v57 = vadd.f32 %v2814_v25, %v2813_v29  ;;  %2373 = vxpose.xlu0.b32.cont [6/16] (narrow) %v2324_v24, 32  ;;  %v3263_v25 = vld [vmem:[%s3525_s28 + $0x20] sm:$0xff] }
 0x3fe   : > { %v2816_v32 = vpop.f32.mrf.mxu0 }
 0x3ff   : > { %v2325_v39 = vmul.f32 %v3242_v22, %v2815_v57 }
 0x400   : > { %v2817_v61 = vpop.f32.mrf.mxu0 }
 0x401   : > { %v2818_v44 = vadd.f32 %v2817_v61, %v2816_v32  ;;  %2374 = vxpose.xlu0.b32.cont [7/16] (narrow) %v2325_v39, 32  ;;  %v3264_v39 = vld [vmem:[%s3525_s28 + $0x30] sm:$0xff] }
 0x402   : > { %v2819_v1 = vpop.f32.mrf.mxu0 }
 0x403   : > { %v2326_v4 = vmul.f32 %v3244_v2, %v2818_v44  ;;  %v3265_v2 = vld [vmem:[%s3525_s28 + $0x8] sm:$0xff] }
 0x404   : > { %v2820_v3 = vpop.f32.mrf.mxu0 }
 0x405   : > { %v2821_v35 = vadd.f32 %v2820_v3, %v2819_v1  ;;  %2375 = vxpose.xlu0.b32.cont [8/16] (narrow) %v2326_v4, 32 }
 0x406   : > { %v2822_v43 = vpop.f32.mrf.mxu0 }
 0x407   : > { %v2327_v14 = vmul.f32 %v3246_v53, %v2821_v35  ;;  %v3266_v35 = vld [vmem:[%s3525_s28 + $0x18] sm:$0xff] }
 0x408   : > { %v2823_v27 = vpop.f32.mrf.mxu0 }
 0x409   : > { %v2824_v28 = vadd.f32 %v2823_v27, %v2822_v43  ;;  %2376 = vxpose.xlu0.b32.cont [9/16] (narrow) %v2327_v14, 32  ;;  %v3267_v14 = vld [vmem:[%s3525_s28 + $0x28] sm:$0xff] }
 0x40a   : > { %v2825_v13 = vpop.f32.mrf.mxu0 }
 0x40b   : > { %v2328_v15 = vmul.f32 %v3248_v10, %v2824_v28 }
 0x40c   : > { %v2826_v5 = vpop.f32.mrf.mxu0 }
 0x40d   : > { %v2827_v58 = vadd.f32 %v2826_v5, %v2825_v13  ;;  %2377 = vxpose.xlu0.b32.cont [10/16] (narrow) %v2328_v15, 32  ;;  %v3268_v13 = vld [vmem:[%s3525_s28 + $0x38] sm:$0xff] }
 0x40e   : > { %v2828_v46 = vpop.f32.mrf.mxu0 }
 0x40f   : > { %v2329_v0 = vmul.f32 %v3250_v6, %v2827_v58 }
 0x410   : > { %v2829_v45 = vpop.f32.mrf.mxu0 }
 0x411   : > { %v2830_v19 = vadd.f32 %v2829_v45, %v2828_v46  ;;  %2378 = vxpose.xlu0.b32.cont [11/16] (narrow) %v2329_v0, 32 }
 0x412   : > { %v2831_v31 = vpop.f32.mrf.mxu0 }
 0x413   : > { %v2330_v56 = vmul.f32 %v3252_v23, %v2830_v19 }
 0x414   : > { %v2832_v17 = vpop.f32.mrf.mxu0 }
 0x415   : > { %v2833_v18 = vadd.f32 %v2832_v17, %v2831_v31  ;;  %2379 = vxpose.xlu0.b32.cont [12/16] (narrow) %v2330_v56, 32 }
 0x416   : > { %v2834_v49 = vpop.f32.mrf.mxu0 }
 0x417   : > { %v2331_v16 = vmul.f32 %v3254_v48, %v2833_v18 }
 0x418   : > { %v2835_v59 = vpop.f32.mrf.mxu0 }
 0x419   : > { %v2836_v47 = vadd.f32 %v2835_v59, %v2834_v49  ;;  %2380 = vxpose.xlu0.b32.cont [13/16] (narrow) %v2331_v16, 32 }
 0x41a   : > { %v2837_v8 = vpop.f32.mrf.mxu0 }
 0x41b   : > { %v2332_v9 = vmul.f32 %v3256_v60, %v2836_v47 }
 0x41c   : > { %v2838_v33 = vpop.f32.mrf.mxu0 }
 0x41d   : > { %v2839_v34 = vadd.f32 %v2838_v33, %v2837_v8  ;;  %2381 = vxpose.xlu0.b32.cont [14/16] (narrow) %v2332_v9, 32 }
 0x41e   : > { %v2840_v51 = vpop.f32.mrf.mxu0 }
 0x41f   : > { %v2333_v52 = vmul.f32 %v3258_v38, %v2839_v34 }
 0x420   : > { %v2841_v41 = vpop.f32.mrf.mxu0 }
 0x421   : > { %v2842_v50 = vadd.f32 %v2841_v41, %v2840_v51  ;;  %2382 = vxpose.xlu0.b32.cont [15/16] (narrow) %v2333_v52, 32 }
 0x423   : > { %v2334_v21 = vmul.f32 %v3260_v20, %v2842_v50 }
 0x425   : > { %2383 = vxpose.xlu0.b32.end [16/16] (narrow) %v2334_v21, 32  ;;  %v2352_v36 = vpop.trf.xlu1 }
 0x426   : > { %v2401_v54 = vmul.f32 %v2400_v62, %v2352_v36 }
 0x428   : > { %v2409_v37 = vadd.f32 %v3261_v55, %v2401_v54 }
 0x429   : > { %v2353_v26 = vpop.trf.xlu1 }
 0x42a   : > { %2417 = vst [vmem:[%s4013_s13] sm:$0xff] %v2409_v37  ;;  %v2403_v63 = vmul.f32 %v2400_v62, %v2353_v26 }
 0x42c   : > { %v2411_v12 = vadd.f32 %v3262_v11, %v2403_v63 }
 0x42d   : > { %v2354_v29 = vpop.trf.xlu1 }
 0x42e   : > { %2419 = vst [vmem:[%s4013_s13 + $0x10] sm:$0xff] %v2411_v12  ;;  %v2405_v24 = vmul.f32 %v2400_v62, %v2354_v29 }
 0x430   : > { %v2413_v57 = vadd.f32 %v3263_v25, %v2405_v24 }
 0x431   : > { %v2355_v22 = vpop.trf.xlu1 }
 0x432   : > { %2421 = vst [vmem:[%s4013_s13 + $0x20] sm:$0xff] %v2413_v57  ;;  %v2407_v32 = vmul.f32 %v2400_v62, %v2355_v22 }
 0x434   : > { %v2415_v40 = vadd.f32 %v3264_v39, %v2407_v32 }
 0x436   : > { %2423 = vst [vmem:[%s4013_s13 + $0x30] sm:$0xff] %v2415_v40 }
 0x465   : > { %v2384_v61 = vpop.trf.xlu0 }
 0x466   : > { %v2402_v44 = vmul.f32 %v2400_v62, %v2384_v61 }
 0x468   : > { %v2410_v1 = vadd.f32 %v3265_v2, %v2402_v44 }
 0x469   : > { %v2385_v4 = vpop.trf.xlu0 }
 0x46a   : > { %2418 = vst [vmem:[%s4013_s13 + $0x8] sm:$0xff] %v2410_v1  ;;  %v2404_v3 = vmul.f32 %v2400_v62, %v2385_v4 }
 0x46c   : > { %v2412_v53 = vadd.f32 %v3266_v35, %v2404_v3 }
 0x46d   : > { %v2386_v42 = vpop.trf.xlu0 }
 0x46e   : > { %2420 = vst [vmem:[%s4013_s13 + $0x18] sm:$0xff] %v2412_v53  ;;  %v2406_v43 = vmul.f32 %v2400_v62, %v2386_v42 }
 0x470   : > { %v2414_v27 = vadd.f32 %v3267_v14, %v2406_v43 }
 0x471   : > { %v2387_v28 = vpop.trf.xlu0 }
 0x472   : > { %2422 = vst [vmem:[%s4013_s13 + $0x28] sm:$0xff] %v2414_v27  ;;  %v2408_v10 = vmul.f32 %v2400_v62, %v2387_v28 }
 0x474   : > { %v2416_v15 = vadd.f32 %v3268_v13, %v2408_v10 }
 0x476   : > { %2424 = vst [vmem:[%s4013_s13 + $0x38] sm:$0xff] %v2416_v15 }
 0x477   : > { %3310 = shalt.err (!%p3307_p6)
}
 0x478   : > { %s3311_s28 = scalar_lea.hbm %s4035_s23, 1024  ;;  %s3315_s13 = scalar_lea.hbm %s4093_s8, 2048 }
 0x479   : > { %p3312_p7 = scmp.ne.s32.totalorder %s4035_s23, %s3311_s28  ;;  %p3316_p13 = scmp.lt.s32.totalorder %s4035_s23, %s4093_s8 }
 0x47a   : > { %p3317_p2 = scmp.lt.s32.totalorder %s3315_s13, %s3311_s28 }
 0x47b   : > { %p3313_p10 = pnand %p3312_p7, %p3486_p9 }
 0x47c   : > { %p3318_p8 = por %p3317_p2, %p3316_p13 }
 0x47d   : > { %p3314_p4 = pneg %p3313_p10 }
 0x47f   : > { %p3319_p12 = pnand %p3318_p8, %p3314_p4 }
 0x481   : > { %3322 = shalt.err (!%p3319_p12)
}
 0x482   : > { %s3385_s25 = smov 256   ;;  %s3386_s22 = smov 16  }
 0x483   : > { %2897 = dma.vmem_to_hbm [thread:$0]  (%p3486_p9), %s4029_s24, 1024, %s4035_s23, %s2426_s16, %s3385_s25, %s3385_s25, %s3386_s22  }
 0x484 PF: > { %s2456_s10 = sand.u32 1, %s3357_s29   ;;  %p4140_p0 = scmp.ge.s32.totalorder %s3377_s12, 2 }
 0x485   : > { %s2457_s26 = scalar_lea.sflag [#allocation7], %s2456_s10 }
 0x486   : > { %p2904_p1 = pnand %p4140_p0, %p3493_p11 }
 0x488   : > { %p2905_p3 = pneg %p2904_p1 }
 0x48a   : > { %3352 = dma.done.wait (%p2905_p3), %s2457_s26, 1024  }
 0x48b   : > { %3354 = vsyncadd (%p2905_p3), %s2457_s26, 4294966272  ;;  %s25_s12 = sadd.s32 1, %s3377_s12   ;;  %s4141_s19 = sld [smem:[#allocation11_spill]] }
 0x48c   : > { %p22_p5 = scmp.ge.s32.totalorder %s25_s12, 4   ;;  %s4142_s29 = smov %s3361_s30 }
 0x48d   : > { %s4143_s30 = smov %s3365_s9  ;;  %s4144_s9 = smov %s3491_s20 }
 0x48e   : > { %s4145_s10 = smov %s3373_s11  ;;  %24 = sbr.rel (!%p22_p5) target bundleno = 8 (0x8), region = 102 }
 0x491   : > { %s4146_s11 = smov %s4141_s19 }
 0x493   :  { %2462 = vsyncpa [#allocation6], 1 }
 0x494   :  { %2464 = vsyncpa [#allocation6 + $0x1], 1 }
 0x495   :  { %2465 = vsyncpa [#allocation7], 1 }
 0x496   :  { %2467 = vsyncpa [#allocation7 + $0x1], 1 }

</bundles_post_ra>
